<compile_context>
chip_gen: v6e
topology: v6e:2x2x1
jax: 0.10.0
libtpu: 0.0.40
codegen_flags: <defaults>
</compile_context>

<pallas_src>
import numpy as np
import jax
import jax.numpy as jnp
from jax.experimental import pallas as pl
from jax.experimental.pallas import tpu as pltpu


# ----------------------------------------------------------------------------
# Host-side operator construction (numpy, static shapes).
# ----------------------------------------------------------------------------
def _bilinear_x2_matrix(n: int) -> np.ndarray:
    """(2n, n) matrix of nn.UpsamplingBilinear2d(scale_factor=2) along one axis
    (align_corners=True: src = i*(n-1)/(2n-1))."""
    m = 2 * n
    A = np.zeros((m, n), dtype=np.float32)
    if n == 1:
        A[:, 0] = 1.0
        return A
    for i in range(m):
        src = i * (n - 1) / (m - 1)
        i0 = min(int(np.floor(src)), n - 1)
        i1 = min(i0 + 1, n - 1)
        f = src - i0
        A[i, i0] += 1.0 - f
        A[i, i1] += f
    return A


def _pad_reflect_rows(A: np.ndarray) -> np.ndarray:
    # ReflectionPad with pad=1 on the output axis: out[-1]=out[1], out[N]=out[N-2]
    return np.concatenate([A[1:2], A, A[-2:-1]], axis=0)


# ----------------------------------------------------------------------------
# Fused kernel: all `times` (upsample x2 + reflect-pad + 3x3 conv) steps for
# one batch element, intermediates kept on-chip.
#
# Layout: activation is 2D (H, C*W)  with  act[h, c*W + w] = x[c, h, w].
# Per step, per tap (dy, dx):
#   out[p, co*W2+q] += sum_{ci,h,w} A_dy[p,h] * act[h, ci*W+w] * G[ci*W+w, co*W2+q]
# where A_dy is the dy-shifted row (H) upsample+pad operator and
#   G_{dy,dx}[ci*W+w, co*W2+q] = conv_w[co,ci,dy,dx] * BT_dx[w,q]
# folds the dx-shifted column (W) operator and the channel mixing together,
# so each tap is two plain 2D matmuls on the MXU.
# ----------------------------------------------------------------------------
def _make_fused_kernel(times: int):
    def kernel(*refs):
        x_ref, o_ref = refs[0], refs[-1]
        step_refs = refs[1:-1]                 # 3 refs per step: A, G, bias
        cur = x_ref[0]                         # (H, Cin*W) f32
        for s in range(times):
            a_ref = step_refs[3 * s + 0]       # (3, H2, H)
            g_ref = step_refs[3 * s + 1]       # (9, Cin*W, Cout*W2)
            b_ref = step_refs[3 * s + 2]       # (1, Cout*W2)
            acc = None
            for dy in range(3):
                u = jnp.dot(a_ref[dy], cur,
                            preferred_element_type=jnp.float32)      # (H2, Cin*W)
                for dx in range(3):
                    t = jnp.dot(u, g_ref[3 * dy + dx],
                                preferred_element_type=jnp.float32)  # (H2, Cout*W2)
                    acc = t if acc is None else acc + t
            cur = acc + b_ref[...]             # bias broadcast over rows
        o_ref[0] = cur.astype(o_ref.dtype)
    return kernel


def increase_resolution(x, params):
    """x: (N, C_in, H, W) float32; params: list of (w (Cout,Cin,3,3), b (Cout,))."""
    times = len(params)
    if times == 0:
        return x
    n, c0, h0, w0 = x.shape

    operands = []
    in_specs = [pl.BlockSpec((1, h0, c0 * w0), lambda i: (i, 0, 0))]

    c_in, h, w = c0, h0, w0
    for (wt, bias) in params:
        c_out = int(wt.shape[0])
        h2, w2 = 2 * h, 2 * w
        A_pad = _pad_reflect_rows(_bilinear_x2_matrix(h))      # (h2+2, h)
        BT_pad = _pad_reflect_rows(_bilinear_x2_matrix(w)).T   # (w, w2+2)

        # Row operators, one per dy tap (precomputed; no in-kernel shifts).
        a_stack = jnp.asarray(
            np.stack([A_pad[dy:dy + h2, :] for dy in range(3)], axis=0))

        # G_{dy,dx}: column operator (x) conv weights -> channel reduction on MXU.
        g_list = []
        for dy in range(3):
            for dx in range(3):
                bt_dx = jnp.asarray(BT_pad[:, dx:dx + w2])     # (w, w2)
                w_tap_t = wt[:, :, dy, dx].T                   # (c_in, c_out)
                g = (w_tap_t[:, None, :, None] * bt_dx[None, :, None, :])
                g_list.append(g.reshape(c_in * w, c_out * w2))
        g_stack = jnp.stack(g_list, axis=0)                    # (9, c_in*w, c_out*w2)

        b_row = jnp.repeat(bias, w2).reshape(1, c_out * w2)    # bias in lane layout

        operands += [a_stack, g_stack, b_row]
        in_specs += [
            pl.BlockSpec((3, h2, h), lambda i: (0, 0, 0)),
            pl.BlockSpec((9, c_in * w, c_out * w2), lambda i: (0, 0, 0)),
            pl.BlockSpec((1, c_out * w2), lambda i: (0, 0)),
        ]
        c_in, h, w = c_out, h2, w2

    # Relayout input to (N, H, C*W) channel-interleaved lanes (cheap XLA op).
    x_lay = jnp.transpose(x, (0, 2, 1, 3)).reshape(n, h0, c0 * w0)

    out_lay = pl.pallas_call(
        _make_fused_kernel(times),
        out_shape=jax.ShapeDtypeStruct((n, h, c_in * w), jnp.float32),
        grid=(n,),
        in_specs=in_specs,
        out_specs=pl.BlockSpec((1, h, c_in * w), lambda i: (i, 0, 0)),
        compiler_params=pltpu.CompilerParams(
            dimension_semantics=("parallel",),
            vmem_limit_bytes=32 * 1024 * 1024),
    )(x_lay, *operands)

    # (N, Hf, Cf*Wf) -> (N, Cf, Hf, Wf)
    return jnp.transpose(out_lay.reshape(n, h, c_in, w), (0, 2, 1, 3))


# ----------------------------------------------------------------------------
# Deterministic param init (PyTorch Conv2d default-style bounds).
# ----------------------------------------------------------------------------
def init_increase_resolution(key, times, in_channels, out_channels):
    params = []
    c_in = in_channels
    for i in range(times):
        if i != 0:
            c_in = out_channels
        key, k1, k2 = jax.random.split(key, 3)
        bound = 1.0 / np.sqrt(c_in * 9)
        w = jax.random.uniform(k1, (out_channels, c_in, 3, 3),
                               jnp.float32, -bound, bound)
        bias = jax.random.uniform(k2, (out_channels,), jnp.float32,
                                  -bound, bound)
        params.append((w, bias))
    return params


# Pure-JAX reference (independent pad/conv code path) for a sanity check.
def _reference(x, params):
    for (w, bias) in params:
        h, wdt = x.shape[2], x.shape[3]
        A = jnp.asarray(_bilinear_x2_matrix(h))
        B = jnp.asarray(_bilinear_x2_matrix(wdt))
        up = jnp.einsum('ih,nchw,jw->ncij', A, x, B)
        up = jnp.pad(up, ((0, 0), (0, 0), (1, 1), (1, 1)), mode='reflect')
        x = jax.lax.conv_general_dilated(
            up, w, window_strides=(1, 1), padding='VALID',
            dimension_numbers=('NCHW', 'OIHW', 'NCHW')) \
            + bias[None, :, None, None]
    return x


if __name__ == "__main__":
    key = jax.random.PRNGKey(0)
    key, kx = jax.random.split(key)

    times, in_channels, out_channels = 2, 4, 4
    x = jax.random.normal(kx, (2, in_channels, 16, 16), jnp.float32)
    params = init_increase_resolution(key, times, in_channels, out_channels)

    fwd = jax.jit(increase_resolution)
    y = jax.block_until_ready(fwd(x, params))

    assert y.shape == (2, out_channels, 16 * (2 ** times), 16 * (2 ** times))
    y_ref = _reference(x, params)
    np.testing.assert_allclose(np.asarray(y), np.asarray(y_ref),
                               rtol=1e-4, atol=1e-4)
    print("KERNEL_OK")
</pallas_src>

<mosaic_0001>
module attributes {stable_mosaic.version = 11 : i64} {
  func.func @kernel(%arg0: i32, %arg1: memref<1x16x64xf32, #tpu.memory_space<vmem>>, %arg2: memref<3x32x16xf32, #tpu.memory_space<vmem>>, %arg3: memref<9x64x128xf32, #tpu.memory_space<vmem>>, %arg4: memref<1x128xf32, #tpu.memory_space<vmem>>, %arg5: memref<3x64x32xf32, #tpu.memory_space<vmem>>, %arg6: memref<9x128x256xf32, #tpu.memory_space<vmem>>, %arg7: memref<1x256xf32, #tpu.memory_space<vmem>>, %arg8: memref<1x64x256xf32, #tpu.memory_space<vmem>>) attributes {dimension_semantics = [#tpu.dimension_semantics<parallel>], iteration_bounds = array<i64: 2>, scalar_prefetch = 0 : i64, scratch_operands = 0 : i64, tpu.core_type = #tpu.core_type<tc>, window_params = [{transform_indices = @transform_0, window_bounds = array<i64: 1, 16, 64>}, {pipeline_mode = #tpu.pipeline_mode<synchronous>, transform_indices = @transform_1, window_bounds = array<i64: 3, 32, 16>}, {pipeline_mode = #tpu.pipeline_mode<synchronous>, transform_indices = @transform_2, window_bounds = array<i64: 9, 64, 128>}, {pipeline_mode = #tpu.pipeline_mode<synchronous>, transform_indices = @transform_3, window_bounds = array<i64: 1, 128>}, {pipeline_mode = #tpu.pipeline_mode<synchronous>, transform_indices = @transform_4, window_bounds = array<i64: 3, 64, 32>}, {pipeline_mode = #tpu.pipeline_mode<synchronous>, transform_indices = @transform_5, window_bounds = array<i64: 9, 128, 256>}, {pipeline_mode = #tpu.pipeline_mode<synchronous>, transform_indices = @transform_6, window_bounds = array<i64: 1, 256>}, {transform_indices = @transform_7, window_bounds = array<i64: 1, 64, 256>}]} {
    %c0 = arith.constant 0 : index
    %c0_0 = arith.constant 0 : index
    %c0_1 = arith.constant 0 : index
    %0 = vector.load %arg1[%c0, %c0_0, %c0_1] : memref<1x16x64xf32, #tpu.memory_space<vmem>>, vector<1x16x64xf32>
    %1 = vector.shape_cast %0 : vector<1x16x64xf32> to vector<16x64xf32>
    %c0_2 = arith.constant 0 : index
    %c0_3 = arith.constant 0 : index
    %c0_4 = arith.constant 0 : index
    %2 = vector.load %arg2[%c0_2, %c0_3, %c0_4] : memref<3x32x16xf32, #tpu.memory_space<vmem>>, vector<1x32x16xf32>
    %3 = vector.shape_cast %2 : vector<1x32x16xf32> to vector<32x16xf32>
    %cst = arith.constant dense<0.000000e+00> : vector<32x64xf32>
    %4 = tpu.matmul %3, %1, %cst {dimension_numbers = #tpu.dot_dimension_numbers<[1], [0], [0], [1], [0, 0, 1, 1], [], []>} : vector<32x16xf32>, vector<16x64xf32>, vector<32x64xf32> -> vector<32x64xf32>
    %c0_5 = arith.constant 0 : index
    %c0_6 = arith.constant 0 : index
    %c0_7 = arith.constant 0 : index
    %5 = vector.load %arg3[%c0_5, %c0_6, %c0_7] : memref<9x64x128xf32, #tpu.memory_space<vmem>>, vector<1x64x128xf32>
    %6 = vector.shape_cast %5 : vector<1x64x128xf32> to vector<64x128xf32>
    %cst_8 = arith.constant dense<0.000000e+00> : vector<32x128xf32>
    %7 = tpu.matmul %4, %6, %cst_8 {dimension_numbers = #tpu.dot_dimension_numbers<[1], [0], [0], [1], [0, 0, 1, 1], [], []>} : vector<32x64xf32>, vector<64x128xf32>, vector<32x128xf32> -> vector<32x128xf32>
    %c1 = arith.constant 1 : index
    %c0_9 = arith.constant 0 : index
    %c0_10 = arith.constant 0 : index
    %8 = vector.load %arg3[%c1, %c0_9, %c0_10] : memref<9x64x128xf32, #tpu.memory_space<vmem>>, vector<1x64x128xf32>
    %9 = vector.shape_cast %8 : vector<1x64x128xf32> to vector<64x128xf32>
    %cst_11 = arith.constant dense<0.000000e+00> : vector<32x128xf32>
    %10 = tpu.matmul %4, %9, %cst_11 {dimension_numbers = #tpu.dot_dimension_numbers<[1], [0], [0], [1], [0, 0, 1, 1], [], []>} : vector<32x64xf32>, vector<64x128xf32>, vector<32x128xf32> -> vector<32x128xf32>
    %11 = arith.addf %7, %10 : vector<32x128xf32>
    %c2 = arith.constant 2 : index
    %c0_12 = arith.constant 0 : index
    %c0_13 = arith.constant 0 : index
    %12 = vector.load %arg3[%c2, %c0_12, %c0_13] : memref<9x64x128xf32, #tpu.memory_space<vmem>>, vector<1x64x128xf32>
    %13 = vector.shape_cast %12 : vector<1x64x128xf32> to vector<64x128xf32>
    %cst_14 = arith.constant dense<0.000000e+00> : vector<32x128xf32>
    %14 = tpu.matmul %4, %13, %cst_14 {dimension_numbers = #tpu.dot_dimension_numbers<[1], [0], [0], [1], [0, 0, 1, 1], [], []>} : vector<32x64xf32>, vector<64x128xf32>, vector<32x128xf32> -> vector<32x128xf32>
    %15 = arith.addf %11, %14 : vector<32x128xf32>
    %c1_15 = arith.constant 1 : index
    %c0_16 = arith.constant 0 : index
    %c0_17 = arith.constant 0 : index
    %16 = vector.load %arg2[%c1_15, %c0_16, %c0_17] : memref<3x32x16xf32, #tpu.memory_space<vmem>>, vector<1x32x16xf32>
    %17 = vector.shape_cast %16 : vector<1x32x16xf32> to vector<32x16xf32>
    %cst_18 = arith.constant dense<0.000000e+00> : vector<32x64xf32>
    %18 = tpu.matmul %17, %1, %cst_18 {dimension_numbers = #tpu.dot_dimension_numbers<[1], [0], [0], [1], [0, 0, 1, 1], [], []>} : vector<32x16xf32>, vector<16x64xf32>, vector<32x64xf32> -> vector<32x64xf32>
    %c3 = arith.constant 3 : index
    %c0_19 = arith.constant 0 : index
    %c0_20 = arith.constant 0 : index
    %19 = vector.load %arg3[%c3, %c0_19, %c0_20] : memref<9x64x128xf32, #tpu.memory_space<vmem>>, vector<1x64x128xf32>
    %20 = vector.shape_cast %19 : vector<1x64x128xf32> to vector<64x128xf32>
    %cst_21 = arith.constant dense<0.000000e+00> : vector<32x128xf32>
    %21 = tpu.matmul %18, %20, %cst_21 {dimension_numbers = #tpu.dot_dimension_numbers<[1], [0], [0], [1], [0, 0, 1, 1], [], []>} : vector<32x64xf32>, vector<64x128xf32>, vector<32x128xf32> -> vector<32x128xf32>
    %22 = arith.addf %15, %21 : vector<32x128xf32>
    %c4 = arith.constant 4 : index
    %c0_22 = arith.constant 0 : index
    %c0_23 = arith.constant 0 : index
    %23 = vector.load %arg3[%c4, %c0_22, %c0_23] : memref<9x64x128xf32, #tpu.memory_space<vmem>>, vector<1x64x128xf32>
    %24 = vector.shape_cast %23 : vector<1x64x128xf32> to vector<64x128xf32>
    %cst_24 = arith.constant dense<0.000000e+00> : vector<32x128xf32>
    %25 = tpu.matmul %18, %24, %cst_24 {dimension_numbers = #tpu.dot_dimension_numbers<[1], [0], [0], [1], [0, 0, 1, 1], [], []>} : vector<32x64xf32>, vector<64x128xf32>, vector<32x128xf32> -> vector<32x128xf32>
    %26 = arith.addf %22, %25 : vector<32x128xf32>
    %c5 = arith.constant 5 : index
    %c0_25 = arith.constant 0 : index
    %c0_26 = arith.constant 0 : index
    %27 = vector.load %arg3[%c5, %c0_25, %c0_26] : memref<9x64x128xf32, #tpu.memory_space<vmem>>, vector<1x64x128xf32>
    %28 = vector.shape_cast %27 : vector<1x64x128xf32> to vector<64x128xf32>
    %cst_27 = arith.constant dense<0.000000e+00> : vector<32x128xf32>
    %29 = tpu.matmul %18, %28, %cst_27 {dimension_numbers = #tpu.dot_dimension_numbers<[1], [0], [0], [1], [0, 0, 1, 1], [], []>} : vector<32x64xf32>, vector<64x128xf32>, vector<32x128xf32> -> vector<32x128xf32>
    %30 = arith.addf %26, %29 : vector<32x128xf32>
    %c2_28 = arith.constant 2 : index
    %c0_29 = arith.constant 0 : index
    %c0_30 = arith.constant 0 : index
    %31 = vector.load %arg2[%c2_28, %c0_29, %c0_30] : memref<3x32x16xf32, #tpu.memory_space<vmem>>, vector<1x32x16xf32>
    %32 = vector.shape_cast %31 : vector<1x32x16xf32> to vector<32x16xf32>
    %cst_31 = arith.constant dense<0.000000e+00> : vector<32x64xf32>
    %33 = tpu.matmul %32, %1, %cst_31 {dimension_numbers = #tpu.dot_dimension_numbers<[1], [0], [0], [1], [0, 0, 1, 1], [], []>} : vector<32x16xf32>, vector<16x64xf32>, vector<32x64xf32> -> vector<32x64xf32>
    %c6 = arith.constant 6 : index
    %c0_32 = arith.constant 0 : index
    %c0_33 = arith.constant 0 : index
    %34 = vector.load %arg3[%c6, %c0_32, %c0_33] : memref<9x64x128xf32, #tpu.memory_space<vmem>>, vector<1x64x128xf32>
    %35 = vector.shape_cast %34 : vector<1x64x128xf32> to vector<64x128xf32>
    %cst_34 = arith.constant dense<0.000000e+00> : vector<32x128xf32>
    %36 = tpu.matmul %33, %35, %cst_34 {dimension_numbers = #tpu.dot_dimension_numbers<[1], [0], [0], [1], [0, 0, 1, 1], [], []>} : vector<32x64xf32>, vector<64x128xf32>, vector<32x128xf32> -> vector<32x128xf32>
    %37 = arith.addf %30, %36 : vector<32x128xf32>
    %c7 = arith.constant 7 : index
    %c0_35 = arith.constant 0 : index
    %c0_36 = arith.constant 0 : index
    %38 = vector.load %arg3[%c7, %c0_35, %c0_36] : memref<9x64x128xf32, #tpu.memory_space<vmem>>, vector<1x64x128xf32>
    %39 = vector.shape_cast %38 : vector<1x64x128xf32> to vector<64x128xf32>
    %cst_37 = arith.constant dense<0.000000e+00> : vector<32x128xf32>
    %40 = tpu.matmul %33, %39, %cst_37 {dimension_numbers = #tpu.dot_dimension_numbers<[1], [0], [0], [1], [0, 0, 1, 1], [], []>} : vector<32x64xf32>, vector<64x128xf32>, vector<32x128xf32> -> vector<32x128xf32>
    %41 = arith.addf %37, %40 : vector<32x128xf32>
    %c8 = arith.constant 8 : index
    %c0_38 = arith.constant 0 : index
    %c0_39 = arith.constant 0 : index
    %42 = vector.load %arg3[%c8, %c0_38, %c0_39] : memref<9x64x128xf32, #tpu.memory_space<vmem>>, vector<1x64x128xf32>
    %43 = vector.shape_cast %42 : vector<1x64x128xf32> to vector<64x128xf32>
    %cst_40 = arith.constant dense<0.000000e+00> : vector<32x128xf32>
    %44 = tpu.matmul %33, %43, %cst_40 {dimension_numbers = #tpu.dot_dimension_numbers<[1], [0], [0], [1], [0, 0, 1, 1], [], []>} : vector<32x64xf32>, vector<64x128xf32>, vector<32x128xf32> -> vector<32x128xf32>
    %45 = arith.addf %41, %44 : vector<32x128xf32>
    %c0_41 = arith.constant 0 : index
    %c0_42 = arith.constant 0 : index
    %46 = vector.load %arg4[%c0_41, %c0_42] : memref<1x128xf32, #tpu.memory_space<vmem>>, vector<1x128xf32>
    %47 = vector.broadcast %46 : vector<1x128xf32> to vector<32x128xf32>
    %48 = arith.addf %45, %47 : vector<32x128xf32>
    %c0_43 = arith.constant 0 : index
    %c0_44 = arith.constant 0 : index
    %c0_45 = arith.constant 0 : index
    %49 = vector.load %arg5[%c0_43, %c0_44, %c0_45] : memref<3x64x32xf32, #tpu.memory_space<vmem>>, vector<1x64x32xf32>
    %50 = vector.shape_cast %49 : vector<1x64x32xf32> to vector<64x32xf32>
    %cst_46 = arith.constant dense<0.000000e+00> : vector<64x128xf32>
    %51 = tpu.matmul %50, %48, %cst_46 {dimension_numbers = #tpu.dot_dimension_numbers<[1], [0], [0], [1], [0, 0, 1, 1], [], []>} : vector<64x32xf32>, vector<32x128xf32>, vector<64x128xf32> -> vector<64x128xf32>
    %c0_47 = arith.constant 0 : index
    %c0_48 = arith.constant 0 : index
    %c0_49 = arith.constant 0 : index
    %52 = vector.load %arg6[%c0_47, %c0_48, %c0_49] : memref<9x128x256xf32, #tpu.memory_space<vmem>>, vector<1x128x256xf32>
    %53 = vector.shape_cast %52 : vector<1x128x256xf32> to vector<128x256xf32>
    %cst_50 = arith.constant dense<0.000000e+00> : vector<64x256xf32>
    %54 = tpu.matmul %51, %53, %cst_50 {dimension_numbers = #tpu.dot_dimension_numbers<[1], [0], [0], [1], [0, 0, 1, 1], [], []>} : vector<64x128xf32>, vector<128x256xf32>, vector<64x256xf32> -> vector<64x256xf32>
    %c1_51 = arith.constant 1 : index
    %c0_52 = arith.constant 0 : index
    %c0_53 = arith.constant 0 : index
    %55 = vector.load %arg6[%c1_51, %c0_52, %c0_53] : memref<9x128x256xf32, #tpu.memory_space<vmem>>, vector<1x128x256xf32>
    %56 = vector.shape_cast %55 : vector<1x128x256xf32> to vector<128x256xf32>
    %cst_54 = arith.constant dense<0.000000e+00> : vector<64x256xf32>
    %57 = tpu.matmul %51, %56, %cst_54 {dimension_numbers = #tpu.dot_dimension_numbers<[1], [0], [0], [1], [0, 0, 1, 1], [], []>} : vector<64x128xf32>, vector<128x256xf32>, vector<64x256xf32> -> vector<64x256xf32>
    %58 = arith.addf %54, %57 : vector<64x256xf32>
    %c2_55 = arith.constant 2 : index
    %c0_56 = arith.constant 0 : index
    %c0_57 = arith.constant 0 : index
    %59 = vector.load %arg6[%c2_55, %c0_56, %c0_57] : memref<9x128x256xf32, #tpu.memory_space<vmem>>, vector<1x128x256xf32>
    %60 = vector.shape_cast %59 : vector<1x128x256xf32> to vector<128x256xf32>
    %cst_58 = arith.constant dense<0.000000e+00> : vector<64x256xf32>
    %61 = tpu.matmul %51, %60, %cst_58 {dimension_numbers = #tpu.dot_dimension_numbers<[1], [0], [0], [1], [0, 0, 1, 1], [], []>} : vector<64x128xf32>, vector<128x256xf32>, vector<64x256xf32> -> vector<64x256xf32>
    %62 = arith.addf %58, %61 : vector<64x256xf32>
    %c1_59 = arith.constant 1 : index
    %c0_60 = arith.constant 0 : index
    %c0_61 = arith.constant 0 : index
    %63 = vector.load %arg5[%c1_59, %c0_60, %c0_61] : memref<3x64x32xf32, #tpu.memory_space<vmem>>, vector<1x64x32xf32>
    %64 = vector.shape_cast %63 : vector<1x64x32xf32> to vector<64x32xf32>
    %cst_62 = arith.constant dense<0.000000e+00> : vector<64x128xf32>
    %65 = tpu.matmul %64, %48, %cst_62 {dimension_numbers = #tpu.dot_dimension_numbers<[1], [0], [0], [1], [0, 0, 1, 1], [], []>} : vector<64x32xf32>, vector<32x128xf32>, vector<64x128xf32> -> vector<64x128xf32>
    %c3_63 = arith.constant 3 : index
    %c0_64 = arith.constant 0 : index
    %c0_65 = arith.constant 0 : index
    %66 = vector.load %arg6[%c3_63, %c0_64, %c0_65] : memref<9x128x256xf32, #tpu.memory_space<vmem>>, vector<1x128x256xf32>
    %67 = vector.shape_cast %66 : vector<1x128x256xf32> to vector<128x256xf32>
    %cst_66 = arith.constant dense<0.000000e+00> : vector<64x256xf32>
    %68 = tpu.matmul %65, %67, %cst_66 {dimension_numbers = #tpu.dot_dimension_numbers<[1], [0], [0], [1], [0, 0, 1, 1], [], []>} : vector<64x128xf32>, vector<128x256xf32>, vector<64x256xf32> -> vector<64x256xf32>
    %69 = arith.addf %62, %68 : vector<64x256xf32>
    %c4_67 = arith.constant 4 : index
    %c0_68 = arith.constant 0 : index
    %c0_69 = arith.constant 0 : index
    %70 = vector.load %arg6[%c4_67, %c0_68, %c0_69] : memref<9x128x256xf32, #tpu.memory_space<vmem>>, vector<1x128x256xf32>
    %71 = vector.shape_cast %70 : vector<1x128x256xf32> to vector<128x256xf32>
    %cst_70 = arith.constant dense<0.000000e+00> : vector<64x256xf32>
    %72 = tpu.matmul %65, %71, %cst_70 {dimension_numbers = #tpu.dot_dimension_numbers<[1], [0], [0], [1], [0, 0, 1, 1], [], []>} : vector<64x128xf32>, vector<128x256xf32>, vector<64x256xf32> -> vector<64x256xf32>
    %73 = arith.addf %69, %72 : vector<64x256xf32>
    %c5_71 = arith.constant 5 : index
    %c0_72 = arith.constant 0 : index
    %c0_73 = arith.constant 0 : index
    %74 = vector.load %arg6[%c5_71, %c0_72, %c0_73] : memref<9x128x256xf32, #tpu.memory_space<vmem>>, vector<1x128x256xf32>
    %75 = vector.shape_cast %74 : vector<1x128x256xf32> to vector<128x256xf32>
    %cst_74 = arith.constant dense<0.000000e+00> : vector<64x256xf32>
    %76 = tpu.matmul %65, %75, %cst_74 {dimension_numbers = #tpu.dot_dimension_numbers<[1], [0], [0], [1], [0, 0, 1, 1], [], []>} : vector<64x128xf32>, vector<128x256xf32>, vector<64x256xf32> -> vector<64x256xf32>
    %77 = arith.addf %73, %76 : vector<64x256xf32>
    %c2_75 = arith.constant 2 : index
    %c0_76 = arith.constant 0 : index
    %c0_77 = arith.constant 0 : index
    %78 = vector.load %arg5[%c2_75, %c0_76, %c0_77] : memref<3x64x32xf32, #tpu.memory_space<vmem>>, vector<1x64x32xf32>
    %79 = vector.shape_cast %78 : vector<1x64x32xf32> to vector<64x32xf32>
    %cst_78 = arith.constant dense<0.000000e+00> : vector<64x128xf32>
    %80 = tpu.matmul %79, %48, %cst_78 {dimension_numbers = #tpu.dot_dimension_numbers<[1], [0], [0], [1], [0, 0, 1, 1], [], []>} : vector<64x32xf32>, vector<32x128xf32>, vector<64x128xf32> -> vector<64x128xf32>
    %c6_79 = arith.constant 6 : index
    %c0_80 = arith.constant 0 : index
    %c0_81 = arith.constant 0 : index
    %81 = vector.load %arg6[%c6_79, %c0_80, %c0_81] : memref<9x128x256xf32, #tpu.memory_space<vmem>>, vector<1x128x256xf32>
    %82 = vector.shape_cast %81 : vector<1x128x256xf32> to vector<128x256xf32>
    %cst_82 = arith.constant dense<0.000000e+00> : vector<64x256xf32>
    %83 = tpu.matmul %80, %82, %cst_82 {dimension_numbers = #tpu.dot_dimension_numbers<[1], [0], [0], [1], [0, 0, 1, 1], [], []>} : vector<64x128xf32>, vector<128x256xf32>, vector<64x256xf32> -> vector<64x256xf32>
    %84 = arith.addf %77, %83 : vector<64x256xf32>
    %c7_83 = arith.constant 7 : index
    %c0_84 = arith.constant 0 : index
    %c0_85 = arith.constant 0 : index
    %85 = vector.load %arg6[%c7_83, %c0_84, %c0_85] : memref<9x128x256xf32, #tpu.memory_space<vmem>>, vector<1x128x256xf32>
    %86 = vector.shape_cast %85 : vector<1x128x256xf32> to vector<128x256xf32>
    %cst_86 = arith.constant dense<0.000000e+00> : vector<64x256xf32>
    %87 = tpu.matmul %80, %86, %cst_86 {dimension_numbers = #tpu.dot_dimension_numbers<[1], [0], [0], [1], [0, 0, 1, 1], [], []>} : vector<64x128xf32>, vector<128x256xf32>, vector<64x256xf32> -> vector<64x256xf32>
    %88 = arith.addf %84, %87 : vector<64x256xf32>
    %c8_87 = arith.constant 8 : index
    %c0_88 = arith.constant 0 : index
    %c0_89 = arith.constant 0 : index
    %89 = vector.load %arg6[%c8_87, %c0_88, %c0_89] : memref<9x128x256xf32, #tpu.memory_space<vmem>>, vector<1x128x256xf32>
    %90 = vector.shape_cast %89 : vector<1x128x256xf32> to vector<128x256xf32>
    %cst_90 = arith.constant dense<0.000000e+00> : vector<64x256xf32>
    %91 = tpu.matmul %80, %90, %cst_90 {dimension_numbers = #tpu.dot_dimension_numbers<[1], [0], [0], [1], [0, 0, 1, 1], [], []>} : vector<64x128xf32>, vector<128x256xf32>, vector<64x256xf32> -> vector<64x256xf32>
    %92 = arith.addf %88, %91 : vector<64x256xf32>
    %c0_91 = arith.constant 0 : index
    %c0_92 = arith.constant 0 : index
    %93 = vector.load %arg7[%c0_91, %c0_92] : memref<1x256xf32, #tpu.memory_space<vmem>>, vector<1x256xf32>
    %94 = vector.broadcast %93 : vector<1x256xf32> to vector<64x256xf32>
    %95 = arith.addf %92, %94 : vector<64x256xf32>
    %c0_93 = arith.constant 0 : index
    %c0_94 = arith.constant 0 : index
    %c0_95 = arith.constant 0 : index
    %96 = vector.load %arg8[%c0_93, %c0_94, %c0_95] : memref<1x64x256xf32, #tpu.memory_space<vmem>>, vector<1x64x256xf32>
    %97 = vector.shape_cast %96 : vector<1x64x256xf32> to vector<64x256xf32>
    %98 = vector.shape_cast %95 : vector<64x256xf32> to vector<1x64x256xf32>
    tpu.vector_store %arg8[%c0_93, %c0_94, %c0_95], %98 {strides = array<i32>} : memref<1x64x256xf32, #tpu.memory_space<vmem>>, vector<1x64x256xf32>,
    return
  }
  func.func @transform_0(%arg0: i32) -> (i32, i32, i32) {
    %c0_i32 = arith.constant 0 : i32
    %c0_i32_0 = arith.constant 0 : i32
    %c0_i32_1 = arith.constant 0 : i32
    return %arg0, %c0_i32, %c0_i32_0 : i32, i32, i32
  }
  func.func @transform_1(%arg0: i32) -> (i32, i32, i32) {
    %c0_i32 = arith.constant 0 : i32
    %c0_i32_0 = arith.constant 0 : i32
    %c0_i32_1 = arith.constant 0 : i32
    %c0_i32_2 = arith.constant 0 : i32
    return %c0_i32, %c0_i32_0, %c0_i32_1 : i32, i32, i32
  }
  func.func @transform_2(%arg0: i32) -> (i32, i32, i32) {
    %c0_i32 = arith.constant 0 : i32
    %c0_i32_0 = arith.constant 0 : i32
    %c0_i32_1 = arith.constant 0 : i32
    %c0_i32_2 = arith.constant 0 : i32
    return %c0_i32, %c0_i32_0, %c0_i32_1 : i32, i32, i32
  }
  func.func @transform_3(%arg0: i32) -> (i32, i32) {
    %c0_i32 = arith.constant 0 : i32
    %c0_i32_0 = arith.constant 0 : i32
    %c0_i32_1 = arith.constant 0 : i32
    return %c0_i32, %c0_i32_0 : i32, i32
  }
  func.func @transform_4(%arg0: i32) -> (i32, i32, i32) {
    %c0_i32 = arith.constant 0 : i32
    %c0_i32_0 = arith.constant 0 : i32
    %c0_i32_1 = arith.constant 0 : i32
    %c0_i32_2 = arith.constant 0 : i32
    return %c0_i32, %c0_i32_0, %c0_i32_1 : i32, i32, i32
  }
  func.func @transform_5(%arg0: i32) -> (i32, i32, i32) {
    %c0_i32 = arith.constant 0 : i32
    %c0_i32_0 = arith.constant 0 : i32
    %c0_i32_1 = arith.constant 0 : i32
    %c0_i32_2 = arith.constant 0 : i32
    return %c0_i32, %c0_i32_0, %c0_i32_1 : i32, i32, i32
  }
  func.func @transform_6(%arg0: i32) -> (i32, i32) {
    %c0_i32 = arith.constant 0 : i32
    %c0_i32_0 = arith.constant 0 : i32
    %c0_i32_1 = arith.constant 0 : i32
    return %c0_i32, %c0_i32_0 : i32, i32
  }
  func.func @transform_7(%arg0: i32) -> (i32, i32, i32) {
    %c0_i32 = arith.constant 0 : i32
    %c0_i32_0 = arith.constant 0 : i32
    %c0_i32_1 = arith.constant 0 : i32
    return %arg0, %c0_i32, %c0_i32_0 : i32, i32, i32
  }
}

</mosaic_0001>

<bundles_post_ra>
// kernel: increase_resolution.1
= control target key start
LH: loop header
LB: loop body
LE: loop exit
PB: predicated region body
PF: predicated region fallthrough
CT: control target
= control target key end

     0   :  { %s4384_s24 = smov 0   ;;  %s6164_s0 = inlined_call_operand.vmem [shape: f32[2,16,64], index: 0, kind: input, shape index: {}]   ;;  %s6165_s1 = inlined_call_operand.vmem [shape: f32[3,32,16], index: 1, kind: input, shape index: {}]   ;;  %s6166_s2 = inlined_call_operand.vmem [shape: f32[9,64,128], index: 2, kind: input, shape index: {}]   ;;  %s6167_s3 = inlined_call_operand.vmem [shape: f32[1,128], index: 3, kind: input, shape index: {}]   ;;  %s6168_s4 = inlined_call_operand.vmem [shape: f32[3,64,32], index: 4, kind: input, shape index: {}]   ;;  %s6169_s5 = inlined_call_operand.vmem [shape: f32[9,128,256], index: 5, kind: input, shape index: {}]   ;;  %s6170_s6 = inlined_call_operand.vmem [shape: f32[1,256], index: 6, kind: input, shape index: {}]   ;;  %s6171_s7 = inlined_call_operand.vmem [shape: f32[2,64,256], index: 7, kind: output, shape index: {}]  }
   0x1 LB: > { %s3446_s25 = sadd.s32 4294967295, %s4341_s24   ;;  %p3450_p0 = scmp.ge.s32.totalorder %s4341_s24, 1  ;;  %s4341_s24 = sphi %s4384_s24, %s17_s24  }
   0x2   : > { %p237_p1 = scmp.lt.s32.totalorder %s4341_s24, 3 }
   0x4   : > { %p238_p2 = pnand %p3450_p0, %p237_p1 }
   0x6   : > { %241 = sbr.rel (%p238_p2) target bundleno = 1610 (0x64a), region = 48 }
   0xb   : > { %p269_p3 = scmp.lt.s32.totalorder %s3446_s25, 1  ;;  %v281_v0 = vld [vmem:[%s6165_s1] sm:$0xff]  ;;  %vm285_vm0 = vcmask 130048   ;;  %v3466_v1 = vld [vmem:[%s6166_s2 + $0x78] sm:$0xff]  ;;  %v3465_v2 = vld [vmem:[%s6166_s2 + $0x70] sm:$0xff]  ;;  %vm400_vm1 = vcmask 523264  }
   0xc   : > { %4042 = vmatprep.mubr.msk.f32.mxu0 %vm285_vm0, %v281_v0  ;;  %4048 = vmatprep.subr.mxu1 %v3466_v1  ;;  %v3464_v3 = vld [vmem:[%s6166_s2 + $0x68] sm:$0xff]  ;;  %v3463_v6 = vld [vmem:[%s6166_s2 + $0x60] sm:$0xff]  ;;  %v283_v8 = vld [vmem:[%s6165_s1 + $0x10] sm:$0xff]  ;;  %vm1516_vm2 = vcmask 261120  }
   0xd   : > { %s6185_s25 = smov (!%p269_p3, %s3446_s25), 1  ;;  %4049 = vmatpush3.msra.mxu1 %v3466_v1  ;;  %v282_v7 = vld [vmem:[%s6165_s1 + $0x8] sm:$0xff]  ;;  %v3462_v9 = vld [vmem:[%s6166_s2 + $0x58] sm:$0xff]  ;;  %v3461_v11 = vld [vmem:[%s6166_s2 + $0x50] sm:$0xff] }
   0xe   : > { %s3874_s9 = sshll.u32 %s6185_s25, 4  ;;  %4050 = vmatprep.subr.mxu1 %v3465_v2  ;;  %v284_v10 = vld [vmem:[%s6165_s1 + $0x18] sm:$0xff]  ;;  %v3487_v12 = vld [vmem:[%s6165_s1 + $0x20] sm:$0xff]  ;;  %v3460_v13 = vld [vmem:[%s6166_s2 + $0x48] sm:$0xff]  ;;  %s3875_s28 = sshll.u32 %s6185_s25, 7 }
   0xf   : > { %s273_s14 = scalar_lea.vmem %s6164_s0, %s3874_s9  ;;  %4051 = vmatpush3.msra.mxu1 %v3465_v2  ;;  %v3488_v14 = vld [vmem:[%s6165_s1 + $0x28] sm:$0xff]  ;;  %v3489_v15 = vld [vmem:[%s6165_s1 + $0x30] sm:$0xff]  ;;  %v3490_v16 = vld [vmem:[%s6165_s1 + $0x38] sm:$0xff]  ;;  %s6098_s8 = scalar_lea.vmem %s6171_s7, %s3875_s28 }
  0x10   : > { %v4411_v4 = vld [vmem:[%s273_s14 + $0x8] sm:$0xff]  ;;  %v4413_v5 = vld [vmem:[%s273_s14] sm:$0xff]  ;;  %4052 = vmatprep.subr.mxu1 %v3464_v3  ;;  %v390_v18 = vld [vmem:[%s6166_s2 + $0x38] sm:$0xff] }
  0x11   : > { %4038 = vmatprep.subr.mxu0 %v4411_v4  ;;  %4053 = vmatpush3.msra.mxu1 %v3464_v3  ;;  %v3459_v17 = vld [vmem:[%s6166_s2 + $0x40] sm:$0xff]  ;;  %v3502_v19 = vld [vmem:[%s6166_s2 + $0xf8] sm:$0xff]  ;;  %v3501_v20 = vld [vmem:[%s6166_s2 + $0xf0] sm:$0xff] }
  0x12   : > { %4039 = vmatpush3.msra.mxu0 %v4411_v4  ;;  %4054 = vmatprep.subr.mxu1 %v3463_v6  ;;  %v3500_v21 = vld [vmem:[%s6166_s2 + $0xe8] sm:$0xff]  ;;  %v3499_v22 = vld [vmem:[%s6166_s2 + $0xe0] sm:$0xff]  ;;  %v3498_v23 = vld [vmem:[%s6166_s2 + $0xd8] sm:$0xff] }
  0x13   : > { %4040 = vmatprep.subr.mxu0 %v4413_v5  ;;  %4055 = vmatpush3.msra.mxu1 %v3463_v6  ;;  %v3497_v24 = vld [vmem:[%s6166_s2 + $0xd0] sm:$0xff]  ;;  %v3496_v25 = vld [vmem:[%s6166_s2 + $0xc8] sm:$0xff]  ;;  %v3495_v26 = vld [vmem:[%s6166_s2 + $0xc0] sm:$0xff] }
  0x14   : > { %4041 = vmatpush3.msra.mxu0 %v4413_v5  ;;  %4056 = vmatprep.subr.mxu1 %v3462_v9  ;;  %v3526_v27 = vld [vmem:[%s6166_s2 + $0x178] sm:$0xff]  ;;  %v389_v30 = vld [vmem:[%s6166_s2 + $0x30] sm:$0xff]  ;;  %v388_v32 = vld [vmem:[%s6166_s2 + $0x28] sm:$0xff] }
  0x15   : > { %4043 = vmatmul.mubr.msk.f32.vlgmr.msra.gmra.mxu0 %vm285_vm0, %v282_v7  ;;  %4114 = vmatprep.subr.mxu0 %v4411_v4  ;;  %v387_v34 = vld [vmem:[%s6166_s2 + $0x20] sm:$0xff]  ;;  %v386_v36 = vld [vmem:[%s6166_s2 + $0x18] sm:$0xff]  ;;  %v385_v38 = vld [vmem:[%s6166_s2 + $0x10] sm:$0xff] }
  0x16   : > { %4045 = vmatprep.mubr.msk.f32.mxu0 %vm285_vm0, %v283_v8  ;;  %4115 = vmatpush3.msra.mxu0 %v4411_v4  ;;  %v3525_v39 = vld [vmem:[%s6166_s2 + $0x170] sm:$0xff]  ;;  %v384_v40 = vld [vmem:[%s6166_s2 + $0x8] sm:$0xff]  ;;  %v383_v42 = vld [vmem:[%s6166_s2] sm:$0xff] }
  0x17   : > { %4116 = vmatprep.subr.mxu0 %v4413_v5  ;;  %4057 = vmatpush3.msra.mxu1 %v3462_v9  ;;  %v3524_v41 = vld [vmem:[%s6166_s2 + $0x168] sm:$0xff]  ;;  %v3523_v43 = vld [vmem:[%s6166_s2 + $0x160] sm:$0xff]  ;;  %v3482_v44 = vld [vmem:[%s6166_s2 + $0xb8] sm:$0xff] }
  0x18   : > { %4117 = vmatpush3.msra.mxu0 %v4413_v5  ;;  %4058 = vmatprep.subr.mxu1 %v3461_v11  ;;  %v3481_v45 = vld [vmem:[%s6166_s2 + $0xb0] sm:$0xff]  ;;  %v3522_v47 = vld [vmem:[%s6166_s2 + $0x158] sm:$0xff]  ;;  %v3480_v48 = vld [vmem:[%s6166_s2 + $0xa8] sm:$0xff] }
  0x19   : > { %4046 = vmatmul.mubr.msk.f32.gmra.mxu0 %vm285_vm0, %v284_v10  ;;  %4059 = vmatpush3.msra.mxu1 %v3461_v11  ;;  %v3479_v49 = vld [vmem:[%s6166_s2 + $0xa0] sm:$0xff]  ;;  %v3521_v51 = vld [vmem:[%s6166_s2 + $0x150] sm:$0xff]  ;;  %v3478_v52 = vld [vmem:[%s6166_s2 + $0x98] sm:$0xff] }
  0x1a   : > { %4118 = vmatprep.mubr.msk.f32.mxu0 %vm285_vm0, %v3487_v12  ;;  %4060 = vmatprep.subr.mxu1 %v3460_v13  ;;  %v3477_v53 = vld [vmem:[%s6166_s2 + $0x90] sm:$0xff]  ;;  %v3520_v54 = vld [vmem:[%s6166_s2 + $0x148] sm:$0xff]  ;;  %v3519_v56 = vld [vmem:[%s6166_s2 + $0x140] sm:$0xff] }
  0x1b   : > { %4061 = vmatpush3.msra.mxu1 %v3460_v13  ;;  %4124 = vmatprep.subr.mxu0 %v3502_v19  ;;  %v3476_v55 = vld [vmem:[%s6166_s2 + $0x88] sm:$0xff]  ;;  %v3475_v57 = vld [vmem:[%s6166_s2 + $0x80] sm:$0xff]  ;;  %v3514_v58 = vld [vmem:[%s6166_s2 + $0x138] sm:$0xff] }
  0x1c   : > { %4062 = vmatprep.subr.mxu1 %v3459_v17  ;;  %v3513_v59 = vld [vmem:[%s6166_s2 + $0x130] sm:$0xff]  ;;  %v3512_v60 = vld [vmem:[%s6166_s2 + $0x128] sm:$0xff]  ;;  %v3511_v61 = vld [vmem:[%s6166_s2 + $0x120] sm:$0xff] }
  0x1d   : > { %4119 = vmatmul.mubr.msk.f32.vlgmr.msra.gmra.mxu0 %vm285_vm0, %v3488_v14  ;;  %4063 = vmatpush3.msra.mxu1 %v3459_v17  ;;  %v3510_v62 = vld [vmem:[%s6166_s2 + $0x118] sm:$0xff]  ;;  %v3509_v63 = vld [vmem:[%s6166_s2 + $0x110] sm:$0xff]  ;;  %v3508_v0 = vld [vmem:[%s6166_s2 + $0x108] sm:$0xff] }
  0x1e   : > { %4121 = vmatprep.mubr.msk.f32.mxu0 %vm285_vm0, %v3489_v15  ;;  %4070 = vmatprep.subr.mxu1 %v390_v18  ;;  %v3507_v1 = vld [vmem:[%s6166_s2 + $0x100] sm:$0xff]  ;;  %v3532_v3 = vld [vmem:[%s6165_s1 + $0x48] sm:$0xff]  ;;  %v3546_v6 = vld [vmem:[%s6166_s2 + $0x1b8] sm:$0xff] }
  0x1f   : > { %4125 = vmatpush3.msra.mxu0 %v3502_v19  ;;  %v3531_v2 = vld [vmem:[%s6165_s1 + $0x40] sm:$0xff]  ;;  %v3558_v7 = vld [vmem:[%s6166_s2 + $0x1f8] sm:$0xff]  ;;  %v3545_v8 = vld [vmem:[%s6166_s2 + $0x1b0] sm:$0xff] }
  0x20   : > { %4126 = vmatprep.subr.mxu0 %v3501_v20  ;;  %v3557_v9 = vld [vmem:[%s6166_s2 + $0x1f0] sm:$0xff]  ;;  %v3544_v10 = vld [vmem:[%s6166_s2 + $0x1a8] sm:$0xff]  ;;  %v3543_v12 = vld [vmem:[%s6166_s2 + $0x1a0] sm:$0xff] }
  0x21   : > { %4122 = vmatmul.mubr.msk.f32.gmra.mxu0 %vm285_vm0, %v3490_v16  ;;  %v3556_v11 = vld [vmem:[%s6166_s2 + $0x1e8] sm:$0xff]  ;;  %v3555_v13 = vld [vmem:[%s6166_s2 + $0x1e0] sm:$0xff]  ;;  %v3542_v14 = vld [vmem:[%s6166_s2 + $0x198] sm:$0xff] }
  0x22   : > { %4127 = vmatpush3.msra.mxu0 %v3501_v20  ;;  %v3554_v15 = vld [vmem:[%s6166_s2 + $0x1d8] sm:$0xff]  ;;  %v3541_v16 = vld [vmem:[%s6166_s2 + $0x190] sm:$0xff]  ;;  %v3552_v19 = vld [vmem:[%s6166_s2 + $0x1c8] sm:$0xff] }
  0x23   : > { %4128 = vmatprep.subr.mxu0 %v3500_v21  ;;  %v3553_v17 = vld [vmem:[%s6166_s2 + $0x1d0] sm:$0xff]  ;;  %v3539_v20 = vld [vmem:[%s6166_s2 + $0x180] sm:$0xff] }
  0x24   : > { %4129 = vmatpush3.msra.mxu0 %v3500_v21  ;;  %v3551_v21 = vld [vmem:[%s6166_s2 + $0x1c0] sm:$0xff] }
  0x25   : > { %4130 = vmatprep.subr.mxu0 %v3499_v22 }
  0x26   : > { %4131 = vmatpush3.msra.mxu0 %v3499_v22  ;;  %v3570_v22 = vld [vmem:[%s6166_s2 + $0x238] sm:$0xff] }
  0x27   : > { %4132 = vmatprep.subr.mxu0 %v3498_v23 }
  0x28   : > { %4133 = vmatpush3.msra.mxu0 %v3498_v23 }
  0x29   : > { %4134 = vmatprep.subr.mxu0 %v3497_v24 }
  0x2a   : > { %4135 = vmatpush3.msra.mxu0 %v3497_v24 }
  0x2b   : > { %4136 = vmatprep.subr.mxu0 %v3496_v25 }
  0x2c   : > { %4137 = vmatpush3.msra.mxu0 %v3496_v25 }
  0x2d   : > { %4138 = vmatprep.subr.mxu0 %v3495_v26 }
  0x2e   : > { %4139 = vmatpush3.msra.mxu0 %v3495_v26 }
  0x2f   : > { %4168 = vmatprep.subr.mxu0 %v3526_v27 }
  0xd5   : > { %v4496_v28 = vpop.f32.mrf.mxu0 }
  0xd7   : > { %v4498_v29 = vpop.f32.mrf.mxu0 }
  0xd8   : > { %4064 = vmatprep.mubr.msk.f32.mxu1 %vm400_vm1, %v4498_v29 }
  0xd9   : > { %v4505_v31 = vpop.f32.mrf.mxu0  ;;  %4065 = vmatmul.mubr.msk.f32.vlgmr.msra.gmra.mxu1 %vm400_vm1, %v4496_v28 }
  0xda   : > { %4071 = vmatpush3.msra.mxu1 %v390_v18  ;;  %v3540_v18 = vld [vmem:[%s6166_s2 + $0x188] sm:$0xff] }
  0xdb   : > { %4072 = vmatprep.subr.mxu1 %v389_v30  ;;  %v4512_v33 = vpop.f32.mrf.mxu0 }
  0xdc   : > { %4073 = vmatpush3.msra.mxu1 %v389_v30  ;;  %4067 = vmatprep.mubr.msk.f32.mxu1 %vm400_vm1, %v4512_v33 }
  0xdd   : > { %4074 = vmatprep.subr.mxu1 %v388_v32  ;;  %4068 = vmatmul.mubr.msk.f32.gmra.mxu1 %vm400_vm1, %v4505_v31  ;;  %v4521_v35 = vpop.f32.mrf.mxu0 }
  0xde   : > { %4075 = vmatpush3.msra.mxu1 %v388_v32  ;;  %4086 = vmatprep.mubr.msk.f32.mxu1 %vm400_vm1, %v4498_v29 }
  0xdf   : > { %4076 = vmatprep.subr.mxu1 %v387_v34  ;;  %v4528_v37 = vpop.f32.mrf.mxu0 }
  0xe0   : > { %4077 = vmatpush3.msra.mxu1 %v387_v34  ;;  %4140 = vmatprep.mubr.msk.f32.mxu0 %vm400_vm1, %v4528_v37 }
  0xe1   : > { %4078 = vmatprep.subr.mxu1 %v386_v36  ;;  %4141 = vmatmul.mubr.msk.f32.vlgmr.msra.gmra.mxu0 %vm400_vm1, %v4521_v35  ;;  %v4558_v46 = vpop.f32.mrf.mxu0 }
  0xe2   : > { %4079 = vmatpush3.msra.mxu1 %v386_v36  ;;  %4169 = vmatpush3.msra.mxu0 %v3526_v27 }
  0xe3   : > { %4080 = vmatprep.subr.mxu1 %v385_v38  ;;  %4170 = vmatprep.subr.mxu0 %v3525_v39  ;;  %v4573_v50 = vpop.f32.mrf.mxu0 }
  0xe4   : > { %4081 = vmatpush3.msra.mxu1 %v385_v38  ;;  %4171 = vmatpush3.msra.mxu0 %v3525_v39 }
  0xe5   : > { %4082 = vmatprep.subr.mxu1 %v384_v40  ;;  %4172 = vmatprep.subr.mxu0 %v3524_v41 }
  0xe6   : > { %4083 = vmatpush3.msra.mxu1 %v384_v40  ;;  %4173 = vmatpush3.msra.mxu0 %v3524_v41 }
  0xe7   : > { %4084 = vmatprep.subr.mxu1 %v383_v42  ;;  %4174 = vmatprep.subr.mxu0 %v3523_v43 }
  0xe8   : > { %4085 = vmatpush3.msra.mxu1 %v383_v42  ;;  %4175 = vmatpush3.msra.mxu0 %v3523_v43 }
  0xe9   : > { %4087 = vmatmul.mubr.msk.f32.vlgmr.msra.gmra.mxu1 %vm400_vm1, %v4496_v28  ;;  %4092 = vmatprep.subr.mxu1 %v3482_v44 }
  0xea   : > { %4089 = vmatprep.mubr.msk.f32.mxu1 %vm400_vm1, %v4512_v33  ;;  %4093 = vmatpush3.msra.mxu1 %v3482_v44 }
  0xeb   : > { %4094 = vmatprep.subr.mxu1 %v3481_v45  ;;  %4176 = vmatprep.subr.mxu0 %v3522_v47 }
  0xec   : > { %4095 = vmatpush3.msra.mxu1 %v3481_v45  ;;  %4177 = vmatpush3.msra.mxu0 %v3522_v47 }
  0xed   : > { %4090 = vmatmul.mubr.msk.f32.gmra.mxu1 %vm400_vm1, %v4505_v31  ;;  %4096 = vmatprep.subr.mxu1 %v3480_v48 }
  0xee   : > { %4097 = vmatpush3.msra.mxu1 %v3480_v48  ;;  %4108 = vmatprep.mubr.msk.f32.mxu1 %vm400_vm1, %v4498_v29 }
  0xef   : > { %4098 = vmatprep.subr.mxu1 %v3479_v49  ;;  %4143 = vmatprep.mubr.msk.f32.mxu0 %vm400_vm1, %v4573_v50 }
  0xf0   : > { %4099 = vmatpush3.msra.mxu1 %v3479_v49  ;;  %4178 = vmatprep.subr.mxu0 %v3521_v51 }
  0xf1   : > { %4100 = vmatprep.subr.mxu1 %v3478_v52  ;;  %4144 = vmatmul.mubr.msk.f32.gmra.mxu0 %vm400_vm1, %v4558_v46 }
  0xf2   : > { %4101 = vmatpush3.msra.mxu1 %v3478_v52  ;;  %4179 = vmatpush3.msra.mxu0 %v3521_v51 }
  0xf3   : > { %4102 = vmatprep.subr.mxu1 %v3477_v53  ;;  %4180 = vmatprep.subr.mxu0 %v3520_v54 }
  0xf4   : > { %4103 = vmatpush3.msra.mxu1 %v3477_v53  ;;  %4181 = vmatpush3.msra.mxu0 %v3520_v54 }
  0xf5   : > { %4104 = vmatprep.subr.mxu1 %v3476_v55  ;;  %4182 = vmatprep.subr.mxu0 %v3519_v56 }
  0xf6   : > { %4105 = vmatpush3.msra.mxu1 %v3476_v55  ;;  %4183 = vmatpush3.msra.mxu0 %v3519_v56 }
  0xf7   : > { %4106 = vmatprep.subr.mxu1 %v3475_v57  ;;  %4184 = vmatprep.mubr.msk.f32.mxu0 %vm400_vm1, %v4528_v37 }
  0xf8   : > { %4107 = vmatpush3.msra.mxu1 %v3475_v57  ;;  %4185 = vmatmul.mubr.msk.f32.vlgmr.msra.gmra.mxu0 %vm400_vm1, %v4521_v35 }
  0xf9   : > { %4109 = vmatmul.mubr.msk.f32.vlgmr.msra.gmra.mxu1 %vm400_vm1, %v4496_v28  ;;  %4146 = vmatprep.subr.mxu1 %v3514_v58 }
  0xfa   : > { %4111 = vmatprep.mubr.msk.f32.mxu1 %vm400_vm1, %v4512_v33  ;;  %4147 = vmatpush3.msra.mxu1 %v3514_v58 }
  0xfb   : > { %4148 = vmatprep.subr.mxu1 %v3513_v59  ;;  %4187 = vmatprep.mubr.msk.f32.mxu0 %vm400_vm1, %v4573_v50 }
  0xfc   : > { %4149 = vmatpush3.msra.mxu1 %v3513_v59  ;;  %4188 = vmatmul.mubr.msk.f32.gmra.mxu0 %vm400_vm1, %v4558_v46 }
  0xfd   : > { %4112 = vmatmul.mubr.msk.f32.gmra.mxu1 %vm400_vm1, %v4505_v31  ;;  %4150 = vmatprep.subr.mxu1 %v3512_v60 }
  0xfe   : > { %4151 = vmatpush3.msra.mxu1 %v3512_v60  ;;  %4162 = vmatprep.mubr.msk.f32.mxu1 %vm400_vm1, %v4528_v37 }
  0xff   : > { %4152 = vmatprep.subr.mxu1 %v3511_v61  ;;  %4222 = vmatprep.subr.mxu0 %v3558_v7 }
 0x100   : > { %4153 = vmatpush3.msra.mxu1 %v3511_v61  ;;  %4223 = vmatpush3.msra.mxu0 %v3558_v7  ;;  %v3569_v61 = vld [vmem:[%s6166_s2 + $0x230] sm:$0xff] }
 0x101   : > { %4154 = vmatprep.subr.mxu1 %v3510_v62  ;;  %4224 = vmatprep.subr.mxu0 %v3557_v9  ;;  %v1676_v7 = vld [vmem:[%s6169_s5 + $0xf0] sm:$0xff] }
 0x102   : > { %4155 = vmatpush3.msra.mxu1 %v3510_v62  ;;  %4225 = vmatpush3.msra.mxu0 %v3557_v9  ;;  %v1674_v9 = vld [vmem:[%s6169_s5 + $0xe0] sm:$0xff] }
 0x103   : > { %4156 = vmatprep.subr.mxu1 %v3509_v63  ;;  %4226 = vmatprep.subr.mxu0 %v3556_v11 }
 0x104   : > { %4157 = vmatpush3.msra.mxu1 %v3509_v63  ;;  %4227 = vmatpush3.msra.mxu0 %v3556_v11  ;;  %v3568_v63 = vld [vmem:[%s6166_s2 + $0x228] sm:$0xff]  ;;  %v1672_v11 = vld [vmem:[%s6169_s5 + $0xd0] sm:$0xff] }
 0x105   : > { %4158 = vmatprep.subr.mxu1 %v3508_v0  ;;  %4228 = vmatprep.subr.mxu0 %v3555_v13 }
 0x106   : > { %4159 = vmatpush3.msra.mxu1 %v3508_v0  ;;  %4229 = vmatpush3.msra.mxu0 %v3555_v13  ;;  %v1670_v13 = vld [vmem:[%s6169_s5 + $0xc0] sm:$0xff] }
 0x107   : > { %4160 = vmatprep.subr.mxu1 %v3507_v1  ;;  %4230 = vmatprep.subr.mxu0 %v3554_v15 }
 0x108   : > { %4161 = vmatpush3.msra.mxu1 %v3507_v1  ;;  %4231 = vmatpush3.msra.mxu0 %v3554_v15  ;;  %v3567_v1 = vld [vmem:[%s6166_s2 + $0x220] sm:$0xff]  ;;  %v1668_v15 = vld [vmem:[%s6169_s5 + $0xb0] sm:$0xff] }
 0x109   : > { %4163 = vmatmul.mubr.msk.f32.vlgmr.msra.gmra.mxu1 %vm400_vm1, %v4521_v35  ;;  %4190 = vmatprep.subr.mxu1 %v4411_v4 }
 0x10a   : > { %4165 = vmatprep.mubr.msk.f32.mxu1 %vm400_vm1, %v4573_v50  ;;  %4191 = vmatpush3.msra.mxu1 %v4411_v4  ;;  %v3533_v4 = vld [vmem:[%s6165_s1 + $0x50] sm:$0xff] }
 0x10b   : > { %4192 = vmatprep.subr.mxu1 %v4413_v5  ;;  %4232 = vmatprep.subr.mxu0 %v3553_v17 }
 0x10c   : > { %4193 = vmatpush3.msra.mxu1 %v4413_v5  ;;  %v3534_v5 = vld [vmem:[%s6165_s1 + $0x58] sm:$0xff]  ;;  %4233 = vmatpush3.msra.mxu0 %v3553_v17  ;;  %v1666_v17 = vld [vmem:[%s6169_s5 + $0xa0] sm:$0xff] }
 0x10d   : > { %4166 = vmatmul.mubr.msk.f32.gmra.mxu1 %vm400_vm1, %v4558_v46  ;;  %4200 = vmatprep.subr.mxu1 %v3546_v6 }
 0x10e   : > { %4194 = vmatprep.mubr.msk.f32.mxu1 %vm285_vm0, %v3531_v2  ;;  %4234 = vmatprep.subr.mxu0 %v3552_v19  ;;  %v3566_v2 = vld [vmem:[%s6166_s2 + $0x218] sm:$0xff] }
 0x10f   : > { %4235 = vmatpush3.msra.mxu0 %v3552_v19  ;;  %v1664_v19 = vld [vmem:[%s6169_s5 + $0x90] sm:$0xff] }
 0x110   : > { %4236 = vmatprep.subr.mxu0 %v3551_v21 }
 0x111   : > { %4195 = vmatmul.mubr.msk.f32.vlgmr.msra.gmra.mxu1 %vm285_vm0, %v3532_v3  ;;  %4237 = vmatpush3.msra.mxu0 %v3551_v21  ;;  %v3565_v3 = vld [vmem:[%s6166_s2 + $0x210] sm:$0xff]  ;;  %v1662_v21 = vld [vmem:[%s6169_s5 + $0x80] sm:$0xff] }
 0x112   : > { %4197 = vmatprep.mubr.msk.f32.mxu1 %vm285_vm0, %v3533_v4  ;;  %4201 = vmatpush3.msra.mxu1 %v3546_v6  ;;  %v3564_v4 = vld [vmem:[%s6166_s2 + $0x208] sm:$0xff]  ;;  %v1677_v6 = vld [vmem:[%s6169_s5 + $0xf8] sm:$0xff] }
 0x113   : > { %4202 = vmatprep.subr.mxu1 %v3545_v8 }
 0x114   : > { %4203 = vmatpush3.msra.mxu1 %v3545_v8  ;;  %v1675_v8 = vld [vmem:[%s6169_s5 + $0xe8] sm:$0xff] }
 0x115   : > { %4198 = vmatmul.mubr.msk.f32.gmra.mxu1 %vm285_vm0, %v3534_v5  ;;  %4204 = vmatprep.subr.mxu1 %v3544_v10  ;;  %v3563_v5 = vld [vmem:[%s6166_s2 + $0x200] sm:$0xff] }
 0x116   : > { %4205 = vmatpush3.msra.mxu1 %v3544_v10  ;;  %v1673_v10 = vld [vmem:[%s6169_s5 + $0xd8] sm:$0xff] }
 0x117   : > { %4206 = vmatprep.subr.mxu1 %v3543_v12 }
 0x118   : > { %4207 = vmatpush3.msra.mxu1 %v3543_v12  ;;  %v1671_v12 = vld [vmem:[%s6169_s5 + $0xc8] sm:$0xff] }
 0x119   : > { %4208 = vmatprep.subr.mxu1 %v3542_v14 }
 0x11a   : > { %4209 = vmatpush3.msra.mxu1 %v3542_v14  ;;  %v1669_v14 = vld [vmem:[%s6169_s5 + $0xb8] sm:$0xff] }
 0x11b   : > { %4210 = vmatprep.subr.mxu1 %v3541_v16 }
 0x11c   : > { %4211 = vmatpush3.msra.mxu1 %v3541_v16  ;;  %v1667_v16 = vld [vmem:[%s6169_s5 + $0xa8] sm:$0xff] }
 0x11d   : > { %4212 = vmatprep.subr.mxu1 %v3540_v18 }
 0x11e   : > { %4213 = vmatpush3.msra.mxu1 %v3540_v18  ;;  %v1665_v18 = vld [vmem:[%s6169_s5 + $0x98] sm:$0xff] }
 0x11f   : > { %4214 = vmatprep.subr.mxu1 %v3539_v20 }
 0x120   : > { %4215 = vmatpush3.msra.mxu1 %v3539_v20  ;;  %v1663_v20 = vld [vmem:[%s6169_s5 + $0x88] sm:$0xff] }
 0x121   : > { %4244 = vmatprep.subr.mxu1 %v3570_v22 }
 0x199   : > { %v4066_v23 = vpop.f32.mrf.mxu1 }
 0x19b   : > { %v479_v24 = vpop.f32.mrf.mxu1 }
 0x19d   : > { %v4069_v25 = vpop.f32.mrf.mxu1 }
 0x19f   : > { %v489_v26 = vpop.f32.mrf.mxu1 }
 0x1a1   : > { %v4142_v41 = vpop.f32.mrf.mxu0 }
 0x1a3   : > { %v870_v44 = vpop.f32.mrf.mxu0 }
 0x1a9   : > { %v4088_v27 = vpop.f32.mrf.mxu1 }
 0x1aa   : > { %v570_v28 = vadd.f32 %v4088_v27, %v4066_v23  ;;  %v1660_v23 = vld [vmem:[%s6169_s5 + $0x70] sm:$0xff] }
 0x1ab   : > { %v564_v29 = vpop.f32.mrf.mxu1  ;;  %v1656_v27 = vld [vmem:[%s6169_s5 + $0x50] sm:$0xff] }
 0x1ac   : > { %v565_v30 = vadd.f32 %v564_v29, %v479_v24  ;;  %v1659_v24 = vld [vmem:[%s6169_s5 + $0x68] sm:$0xff]  ;;  %v1654_v29 = vld [vmem:[%s6169_s5 + $0x40] sm:$0xff] }
 0x1ad   : > { %v4091_v31 = vpop.f32.mrf.mxu1 }
 0x1ae   : > { %v580_v32 = vadd.f32 %v4091_v31, %v4069_v25  ;;  %v1658_v25 = vld [vmem:[%s6169_s5 + $0x60] sm:$0xff]  ;;  %v1652_v31 = vld [vmem:[%s6169_s5 + $0x30] sm:$0xff] }
 0x1af   : > { %v574_v33 = vpop.f32.mrf.mxu1 }
 0x1b0   : > { %v575_v34 = vadd.f32 %v574_v33, %v489_v26  ;;  %v1657_v26 = vld [vmem:[%s6169_s5 + $0x58] sm:$0xff]  ;;  %v1650_v33 = vld [vmem:[%s6169_s5 + $0x20] sm:$0xff] }
 0x1b1   : > { %v4145_v45 = vpop.f32.mrf.mxu0 }
 0x1b3   : > { %v880_v50 = vpop.f32.mrf.mxu0 }
 0x1b9   : > { %v4110_v35 = vpop.f32.mrf.mxu1 }
 0x1ba   : > { %v678_v36 = vadd.f32 %v4110_v35, %v570_v28  ;;  %v1655_v28 = vld [vmem:[%s6169_s5 + $0x48] sm:$0xff]  ;;  %v1648_v35 = vld [vmem:[%s6169_s5 + $0x10] sm:$0xff] }
 0x1bb   : > { %v658_v37 = vpop.f32.mrf.mxu1 }
 0x1bc   : > { %v677_v38 = vadd.f32 %v658_v37, %v565_v30  ;;  %v890_v46 = vadd.f32 %v4142_v41, %v678_v36  ;;  %v1653_v30 = vld [vmem:[%s6169_s5 + $0x38] sm:$0xff]  ;;  %v1647_v36 = vld [vmem:[%s6169_s5 + $0x8] sm:$0xff]  ;;  %v1646_v37 = vld [vmem:[%s6169_s5] sm:$0xff] }
 0x1bd   : > { %v4113_v39 = vpop.f32.mrf.mxu1 }
 0x1be   : > { %v680_v40 = vadd.f32 %v4113_v39, %v580_v32  ;;  %v889_v48 = vadd.f32 %v870_v44, %v677_v38  ;;  %v1651_v32 = vld [vmem:[%s6169_s5 + $0x28] sm:$0xff]  ;;  %v1508_v38 = vld [vmem:[%s6168_s4] sm:$0xff]  ;;  %v4186_v39 = vpop.f32.mrf.mxu0 }
 0x1bf   : > { %v668_v42 = vpop.f32.mrf.mxu1 }
 0x1c0   : > { %v679_v43 = vadd.f32 %v668_v42, %v575_v34  ;;  %v892_v52 = vadd.f32 %v4145_v45, %v680_v40  ;;  %v1649_v34 = vld [vmem:[%s6169_s5 + $0x18] sm:$0xff]  ;;  %v1066_v40 = vpop.f32.mrf.mxu0 }
 0x1c2   : > { %v891_v55 = vadd.f32 %v880_v50, %v679_v43  ;;  %v4189_v41 = vpop.f32.mrf.mxu0 }
 0x1c4   : > { %v1076_v43 = vpop.f32.mrf.mxu0 }
 0x1c9   : > { %v4164_v47 = vpop.f32.mrf.mxu1 }
 0x1ca   : > { %v4721_v49 = vadd.f32 %v4164_v47, %v890_v46 }
 0x1cb   : > { %v968_v51 = vpop.f32.mrf.mxu1 }
 0x1cc   : > { %v4723_v53 = vadd.f32 %v968_v51, %v889_v48 }
 0x1cd   : > { %v4167_v54 = vpop.f32.mrf.mxu1 }
 0x1ce   : > { %v4725_v56 = vadd.f32 %v4167_v54, %v892_v52  ;;  %v1086_v52 = vadd.f32 %v4186_v39, %v4721_v49  ;;  %v3575_v49 = vld [vmem:[%s6167_s3] ss:$0 sm:$0xff]  ;;  %v3595_v39 = vld [vmem:[%s6169_s5 + $0x158] sm:$0xff] }
 0x1cf   : > { %v978_v57 = vpop.f32.mrf.mxu1 }
 0x1d0   : > { %v4727_v58 = vadd.f32 %v978_v57, %v891_v55  ;;  %v1088_v48 = vadd.f32 %v4189_v41, %v4725_v56  ;;  %v3593_v41 = vld [vmem:[%s6169_s5 + $0x148] sm:$0xff] }
 0x1d1   : > { %v4196_v59 = vpop.f32.mrf.mxu1 }
 0x1d2   : > { %v1087_v55 = vadd.f32 %v1076_v43, %v4727_v58  ;;  %v3591_v43 = vld [vmem:[%s6169_s5 + $0x138] sm:$0xff] }
 0x1d3   : > { %v1172_v60 = vpop.f32.mrf.mxu1 }
 0x1d4   : > { %4216 = vmatprep.mubr.msk.f32.mxu1 %vm400_vm1, %v1172_v60  ;;  %4238 = vmatprep.mubr.msk.f32.mxu0 %vm400_vm1, %v1172_v60 }
 0x1d5   : > { %v4199_v62 = vpop.f32.mrf.mxu1  ;;  %4217 = vmatmul.mubr.msk.f32.vlgmr.msra.gmra.mxu1 %vm400_vm1, %v4196_v59  ;;  %4239 = vmatmul.mubr.msk.f32.vlgmr.msra.gmra.mxu0 %vm400_vm1, %v4196_v59 }
 0x1d6   : > { %4245 = vmatpush3.msra.mxu1 %v3570_v22  ;;  %v1661_v22 = vld [vmem:[%s6169_s5 + $0x78] sm:$0xff] }
 0x1d7   : > { %4246 = vmatprep.subr.mxu1 %v3569_v61  ;;  %v1182_v0 = vpop.f32.mrf.mxu1 }
 0x1d8   : > { %4247 = vmatpush3.msra.mxu1 %v3569_v61  ;;  %4219 = vmatprep.mubr.msk.f32.mxu1 %vm400_vm1, %v1182_v0 }
 0x1d9   : > { %4248 = vmatprep.subr.mxu1 %v3568_v63  ;;  %4220 = vmatmul.mubr.msk.f32.gmra.mxu1 %vm400_vm1, %v4199_v62 }
 0x1da   : > { %4249 = vmatpush3.msra.mxu1 %v3568_v63  ;;  %4241 = vmatprep.mubr.msk.f32.mxu0 %vm400_vm1, %v1182_v0 }
 0x1db   : > { %4250 = vmatprep.subr.mxu1 %v3567_v1  ;;  %4260 = vmatprep.mubr.msk.f32.mxu1 %vm400_vm1, %v1172_v60  ;;  %v1085_v60 = vadd.f32 %v1066_v40, %v4723_v53  ;;  %v3594_v40 = vld [vmem:[%s6169_s5 + $0x150] sm:$0xff] }
 0x1dc   : > { %4242 = vmatmul.mubr.msk.f32.gmra.mxu0 %vm400_vm1, %v4199_v62  ;;  %4251 = vmatpush3.msra.mxu1 %v3567_v1 }
 0x1dd   : > { %4252 = vmatprep.subr.mxu1 %v3566_v2  ;;  %4274 = vmatprep.mubr.msk.f32.mxu0 %vm1516_vm2, %v1508_v38  ;;  %v3596_v38 = vld [vmem:[%s6169_s5 + $0x160] sm:$0xff] }
 0x1de   : > { %4253 = vmatpush3.msra.mxu1 %v3566_v2 }
 0x1df   : > { %4254 = vmatprep.subr.mxu1 %v3565_v3 }
 0x1e0   : > { %4255 = vmatpush3.msra.mxu1 %v3565_v3 }
 0x1e1   : > { %4256 = vmatprep.subr.mxu1 %v3564_v4 }
 0x1e2   : > { %4257 = vmatpush3.msra.mxu1 %v3564_v4 }
 0x1e3   : > { %4258 = vmatprep.subr.mxu1 %v3563_v5 }
 0x1e4   : > { %4259 = vmatpush3.msra.mxu1 %v3563_v5 }
 0x1e5   : > { %4261 = vmatmul.mubr.msk.f32.vlgmr.msra.gmra.mxu1 %vm400_vm1, %v4196_v59  ;;  %1824 = vmatprep.subr.mxu1 %v1677_v6 }
 0x1e6   : > { %4263 = vmatprep.mubr.msk.f32.mxu1 %vm400_vm1, %v1182_v0  ;;  %1825 = vmatpush1.msra.mxu1 %v1676_v7 }
 0x1e7   : > { %1826 = vmatprep.subr.mxu1 %v1675_v8 }
 0x1e8   : > { %1827 = vmatpush1.msra.mxu1 %v1674_v9 }
 0x1e9   : > { %4264 = vmatmul.mubr.msk.f32.gmra.mxu1 %vm400_vm1, %v4199_v62  ;;  %1828 = vmatprep.subr.mxu1 %v1673_v10 }
 0x1ea   : > { %1829 = vmatpush1.msra.mxu1 %v1672_v11 }
 0x1eb   : > { %1830 = vmatprep.subr.mxu1 %v1671_v12  ;;  %v1509_v12 = vld [vmem:[%s6168_s4 + $0x8] sm:$0xff] }
 0x1ec   : > { %1831 = vmatpush1.msra.mxu1 %v1670_v13  ;;  %v3615_v13 = vld [vmem:[%s6169_s5 + $0x1f8] sm:$0xff] }
 0x1ed   : > { %1832 = vmatprep.subr.mxu1 %v1669_v14  ;;  %v1510_v14 = vld [vmem:[%s6168_s4 + $0x10] sm:$0xff] }
 0x1ee   : > { %1833 = vmatpush1.msra.mxu1 %v1668_v15  ;;  %v3614_v15 = vld [vmem:[%s6169_s5 + $0x1f0] sm:$0xff] }
 0x1ef   : > { %1834 = vmatprep.subr.mxu1 %v1667_v16  ;;  %v3613_v16 = vld [vmem:[%s6169_s5 + $0x1e8] sm:$0xff] }
 0x1f0   : > { %1835 = vmatpush1.msra.mxu1 %v1666_v17  ;;  %v3612_v17 = vld [vmem:[%s6169_s5 + $0x1e0] sm:$0xff] }
 0x1f1   : > { %1836 = vmatprep.subr.mxu1 %v1665_v18  ;;  %v1511_v18 = vld [vmem:[%s6168_s4 + $0x18] sm:$0xff] }
 0x1f2   : > { %1837 = vmatpush1.msra.mxu1 %v1664_v19  ;;  %v3611_v19 = vld [vmem:[%s6169_s5 + $0x1d8] sm:$0xff] }
 0x1f3   : > { %1838 = vmatprep.subr.mxu1 %v1663_v20  ;;  %v1512_v20 = vld [vmem:[%s6168_s4 + $0x20] sm:$0xff] }
 0x1f4   : > { %1839 = vmatpush1.msra.mxu1 %v1662_v21  ;;  %v3610_v21 = vld [vmem:[%s6169_s5 + $0x1d0] sm:$0xff] }
 0x1f5   : > { %1840 = vmatprep.subr.mxu1 %v1661_v22  ;;  %v3609_v22 = vld [vmem:[%s6169_s5 + $0x1c8] sm:$0xff] }
 0x1f6   : > { %1841 = vmatpush1.msra.mxu1 %v1660_v23  ;;  %v3608_v23 = vld [vmem:[%s6169_s5 + $0x1c0] sm:$0xff] }
 0x1f7   : > { %1842 = vmatprep.subr.mxu1 %v1659_v24  ;;  %v1513_v24 = vld [vmem:[%s6168_s4 + $0x28] sm:$0xff] }
 0x1f8   : > { %1843 = vmatpush1.msra.mxu1 %v1658_v25  ;;  %v3607_v25 = vld [vmem:[%s6169_s5 + $0x1b8] sm:$0xff] }
 0x1f9   : > { %1844 = vmatprep.subr.mxu1 %v1657_v26  ;;  %v1514_v26 = vld [vmem:[%s6168_s4 + $0x30] sm:$0xff] }
 0x1fa   : > { %1845 = vmatpush1.msra.mxu1 %v1656_v27  ;;  %v3606_v27 = vld [vmem:[%s6169_s5 + $0x1b0] sm:$0xff] }
 0x1fb   : > { %1846 = vmatprep.subr.mxu1 %v1655_v28  ;;  %v3605_v28 = vld [vmem:[%s6169_s5 + $0x1a8] sm:$0xff] }
 0x1fc   : > { %1847 = vmatpush1.msra.mxu1 %v1654_v29  ;;  %v3604_v29 = vld [vmem:[%s6169_s5 + $0x1a0] sm:$0xff] }
 0x1fd   : > { %1848 = vmatprep.subr.mxu1 %v1653_v30  ;;  %v1515_v30 = vld [vmem:[%s6168_s4 + $0x38] sm:$0xff] }
 0x1fe   : > { %1849 = vmatpush1.msra.mxu1 %v1652_v31  ;;  %v3603_v31 = vld [vmem:[%s6169_s5 + $0x198] sm:$0xff] }
 0x1ff   : > { %1850 = vmatprep.subr.mxu1 %v1651_v32  ;;  %v3602_v32 = vld [vmem:[%s6169_s5 + $0x190] sm:$0xff] }
 0x200   : > { %1851 = vmatpush1.msra.mxu1 %v1650_v33  ;;  %v3601_v33 = vld [vmem:[%s6169_s5 + $0x188] sm:$0xff] }
 0x201   : > { %1852 = vmatprep.subr.mxu1 %v1649_v34  ;;  %v3600_v34 = vld [vmem:[%s6169_s5 + $0x180] sm:$0xff] }
 0x202   : > { %1853 = vmatpush1.msra.mxu1 %v1648_v35  ;;  %v3599_v35 = vld [vmem:[%s6169_s5 + $0x178] sm:$0xff] }
 0x203   : > { %1854 = vmatprep.subr.mxu1 %v1647_v36  ;;  %v3598_v36 = vld [vmem:[%s6169_s5 + $0x170] sm:$0xff] }
 0x204   : > { %1855 = vmatpush1.msra.mxu1 %v1646_v37  ;;  %v3597_v37 = vld [vmem:[%s6169_s5 + $0x168] sm:$0xff] }
 0x295   : > { %v4218_v42 = vpop.f32.mrf.mxu1  ;;  %v4240_v45 = vpop.f32.mrf.mxu0 }
 0x296   : > { %v1298_v59 = vadd.f32 %v4218_v42, %v1086_v52  ;;  %v3592_v42 = vld [vmem:[%s6169_s5 + $0x140] sm:$0xff]  ;;  %v4343_v52 = vmov 0.0  }
 0x297   : > { %v1278_v44 = vpop.f32.mrf.mxu1  ;;  %v1376_v47 = vpop.f32.mrf.mxu0  ;;  %1888 = vmatprep.mubr.f32.mxu1 %v4343_v52 }
 0x298   : > { %v1297_v0 = vadd.f32 %v1278_v44, %v1085_v60  ;;  %v1396_v3 = vadd.f32 %v4240_v45, %v1298_v59  ;;  %v3590_v44 = vld [vmem:[%s6169_s5 + $0x130] sm:$0xff]  ;;  %v3589_v45 = vld [vmem:[%s6169_s5 + $0x128] sm:$0xff] }
 0x299   : > { %v4221_v46 = vpop.f32.mrf.mxu1  ;;  %v3645_v60 = vld [vmem:[%s6169_s5 + $0x2e8] sm:$0xff] }
 0x29a   : > { %v1300_v54 = vadd.f32 %v4221_v46, %v1088_v48  ;;  %v1395_v6 = vadd.f32 %v1376_v47, %v1297_v0  ;;  %v3588_v46 = vld [vmem:[%s6169_s5 + $0x120] sm:$0xff]  ;;  %v3587_v47 = vld [vmem:[%s6169_s5 + $0x118] sm:$0xff]  ;;  %v3586_v48 = vld [vmem:[%s6169_s5 + $0x110] sm:$0xff] }
 0x29b   : > { %v1288_v50 = vpop.f32.mrf.mxu1  ;;  %v3641_v0 = vld [vmem:[%s6169_s5 + $0x2c8] sm:$0xff] }
 0x29c   : > { %v4243_v51 = vpop.f32.mrf.mxu0  ;;  %v1299_v61 = vadd.f32 %v1288_v50, %v1087_v55  ;;  %v3585_v50 = vld [vmem:[%s6169_s5 + $0x108] sm:$0xff] }
 0x29d   : > { %v1398_v1 = vadd.f32 %v4243_v51, %v1300_v54  ;;  %v3584_v51 = vld [vmem:[%s6169_s5 + $0x100] sm:$0xff]  ;;  %v3647_v54 = vld [vmem:[%s6169_s5 + $0x2f8] sm:$0xff] }
 0x29e   : > { %v1386_v62 = vpop.f32.mrf.mxu0 }
 0x29f   : > { %v1397_v4 = vadd.f32 %v1386_v62, %v1299_v61  ;;  %v3644_v61 = vld [vmem:[%s6169_s5 + $0x2e0] sm:$0xff]  ;;  %v3643_v62 = vld [vmem:[%s6169_s5 + $0x2d8] sm:$0xff] }
 0x2a5   : > { %v4262_v57 = vpop.f32.mrf.mxu1 }
 0x2a6   : > { %v1494_v58 = vadd.f32 %v4262_v57, %v1396_v3  ;;  %v3646_v57 = vld [vmem:[%s6169_s5 + $0x2f0] sm:$0xff]  ;;  %v3639_v3 = vld [vmem:[%s6169_s5 + $0x2b8] sm:$0xff] }
 0x2a7   : > { %v1474_v63 = vpop.f32.mrf.mxu1 }
 0x2a8   : > { %v1493_v53 = vadd.f32 %v1474_v63, %v1395_v6  ;;  %v4876_v10 = vadd.f32 %v3575_v49, %v1494_v58  ;;  %v3642_v63 = vld [vmem:[%s6169_s5 + $0x2d0] sm:$0xff]  ;;  %v3636_v6 = vld [vmem:[%s6169_s5 + $0x2a0] sm:$0xff]  ;;  %v3635_v58 = vld [vmem:[%s6169_s5 + $0x298] sm:$0xff] }
 0x2a9   : > { %v4265_v2 = vpop.f32.mrf.mxu1 }
 0x2aa   : > { %v1496_v56 = vadd.f32 %v4265_v2, %v1398_v1  ;;  %v4880_v11 = vadd.f32 %v3575_v49, %v1493_v53  ;;  %v3640_v2 = vld [vmem:[%s6169_s5 + $0x2c0] sm:$0xff]  ;;  %v3634_v53 = vld [vmem:[%s6169_s5 + $0x290] sm:$0xff] }
 0x2ab   : > { %v1484_v5 = vpop.f32.mrf.mxu1 }
 0x2ac   : > { %v4869_v7 = vadd.f32 %v3575_v49, %v1496_v56  ;;  %v1495_v8 = vadd.f32 %v1484_v5, %v1397_v4  ;;  %v3638_v56 = vld [vmem:[%s6169_s5 + $0x2b0] sm:$0xff]  ;;  %v3727_v5 = vld [vmem:[%s6169_s5 + $0x4f8] sm:$0xff] }
 0x2ae   : > { %v4871_v9 = vadd.f32 %v3575_v49, %v1495_v8  ;;  %4266 = vmatprep.subr.mxu0 %v4869_v7  ;;  %4286 = vmatprep.subr.mxu1 %v4869_v7  ;;  %v3637_v49 = vld [vmem:[%s6169_s5 + $0x2a8] sm:$0xff] }
 0x2af   : > { %4267 = vmatpush3.msra.mxu0 %v4869_v7 }
 0x2b0   : > { %4268 = vmatprep.subr.mxu0 %v4871_v9 }
 0x2b1   : > { %4269 = vmatpush3.msra.mxu0 %v4871_v9 }
 0x2b2   : > { %4270 = vmatprep.subr.mxu0 %v4876_v10 }
 0x2b3   : > { %4271 = vmatpush3.msra.mxu0 %v4876_v10 }
 0x2b4   : > { %4272 = vmatprep.subr.mxu0 %v4880_v11 }
 0x2b5   : > { %4273 = vmatpush3.msra.mxu0 %v4880_v11 }
 0x2b6   : > { %4275 = vmatmul.mubr.msk.f32.vlgmr.msra.gmra.mxu0 %vm1516_vm2, %v1509_v12  ;;  %1711 = vmatprep.subr.mxu0 %v3615_v13  ;;  %v3633_v12 = vld [vmem:[%s6169_s5 + $0x288] sm:$0xff]  ;;  %v3632_v13 = vld [vmem:[%s6169_s5 + $0x280] sm:$0xff] }
 0x2b7   : > { %4277 = vmatprep.mubr.msk.f32.mxu0 %vm1516_vm2, %v1510_v14  ;;  %1712 = vmatpush1.msra.mxu0 %v3614_v15  ;;  %v3631_v14 = vld [vmem:[%s6169_s5 + $0x278] sm:$0xff] }
 0x2b8   : > { %1713 = vmatprep.subr.mxu0 %v3613_v16  ;;  %v3630_v16 = vld [vmem:[%s6169_s5 + $0x270] sm:$0xff] }
 0x2b9   : > { %1714 = vmatpush1.msra.mxu0 %v3612_v17  ;;  %v3629_v17 = vld [vmem:[%s6169_s5 + $0x268] sm:$0xff] }
 0x2ba   : > { %4278 = vmatmul.mubr.msk.f32.gmra.mxu0 %vm1516_vm2, %v1511_v18  ;;  %1715 = vmatprep.subr.mxu0 %v3611_v19  ;;  %v3628_v18 = vld [vmem:[%s6169_s5 + $0x260] sm:$0xff]  ;;  %v3627_v19 = vld [vmem:[%s6169_s5 + $0x258] sm:$0xff] }
 0x2bb   : > { %4280 = vmatprep.mubr.msk.f32.mxu0 %vm1516_vm2, %v1512_v20  ;;  %1716 = vmatpush1.msra.mxu0 %v3610_v21  ;;  %v3626_v21 = vld [vmem:[%s6169_s5 + $0x250] sm:$0xff] }
 0x2bc   : > { %1717 = vmatprep.subr.mxu0 %v3609_v22  ;;  %v3625_v22 = vld [vmem:[%s6169_s5 + $0x248] sm:$0xff] }
 0x2bd   : > { %1718 = vmatpush1.msra.mxu0 %v3608_v23  ;;  %v3624_v23 = vld [vmem:[%s6169_s5 + $0x240] sm:$0xff] }
 0x2be   : > { %4281 = vmatmul.mubr.msk.f32.gmra.mxu0 %vm1516_vm2, %v1513_v24  ;;  %1719 = vmatprep.subr.mxu0 %v3607_v25  ;;  %v3623_v24 = vld [vmem:[%s6169_s5 + $0x238] sm:$0xff] }
 0x2bf   : > { %4283 = vmatprep.mubr.msk.f32.mxu0 %vm1516_vm2, %v1514_v26  ;;  %1720 = vmatpush1.msra.mxu0 %v3606_v27  ;;  %v3622_v26 = vld [vmem:[%s6169_s5 + $0x230] sm:$0xff]  ;;  %v3621_v27 = vld [vmem:[%s6169_s5 + $0x228] sm:$0xff] }
 0x2c0   : > { %1721 = vmatprep.subr.mxu0 %v3605_v28  ;;  %v3620_v28 = vld [vmem:[%s6169_s5 + $0x220] sm:$0xff] }
 0x2c1   : > { %1722 = vmatpush1.msra.mxu0 %v3604_v29  ;;  %v3619_v29 = vld [vmem:[%s6169_s5 + $0x218] sm:$0xff] }
 0x2c2   : > { %4284 = vmatmul.mubr.msk.f32.gmra.mxu0 %vm1516_vm2, %v1515_v30  ;;  %1723 = vmatprep.subr.mxu0 %v3603_v31  ;;  %v3618_v30 = vld [vmem:[%s6169_s5 + $0x210] sm:$0xff]  ;;  %v3617_v31 = vld [vmem:[%s6169_s5 + $0x208] sm:$0xff] }
 0x2c3   : > { %1724 = vmatpush1.msra.mxu0 %v3602_v32  ;;  %1775 = vmatprep.mubr.f32.mxu0 %v4343_v52  ;;  %v3648_v32 = vld [vmem:[%s6168_s4 + $0x40] sm:$0xff] }
 0x2c4   : > { %1725 = vmatprep.subr.mxu0 %v3601_v33  ;;  %v3616_v33 = vld [vmem:[%s6169_s5 + $0x200] sm:$0xff] }
 0x2c5   : > { %1726 = vmatpush1.msra.mxu0 %v3600_v34  ;;  %v3649_v34 = vld [vmem:[%s6168_s4 + $0x48] sm:$0xff] }
 0x2c6   : > { %1727 = vmatprep.subr.mxu0 %v3599_v35  ;;  %v3726_v35 = vld [vmem:[%s6169_s5 + $0x4f0] sm:$0xff] }
 0x2c7   : > { %1728 = vmatpush1.msra.mxu0 %v3598_v36  ;;  %v3725_v36 = vld [vmem:[%s6169_s5 + $0x4e8] sm:$0xff] }
 0x2c8   : > { %1729 = vmatprep.subr.mxu0 %v3597_v37  ;;  %v3724_v37 = vld [vmem:[%s6169_s5 + $0x4e0] sm:$0xff] }
 0x2c9   : > { %1730 = vmatpush1.msra.mxu0 %v3596_v38  ;;  %v3650_v38 = vld [vmem:[%s6168_s4 + $0x50] sm:$0xff] }
 0x2ca   : > { %1731 = vmatprep.subr.mxu0 %v3595_v39  ;;  %v3723_v39 = vld [vmem:[%s6169_s5 + $0x4d8] sm:$0xff] }
 0x2cb   : > { %1732 = vmatpush1.msra.mxu0 %v3594_v40  ;;  %v3651_v40 = vld [vmem:[%s6168_s4 + $0x58] sm:$0xff] }
 0x2cc   : > { %1733 = vmatprep.subr.mxu0 %v3593_v41  ;;  %v3722_v41 = vld [vmem:[%s6169_s5 + $0x4d0] sm:$0xff] }
 0x2cd   : > { %1734 = vmatpush1.msra.mxu0 %v3592_v42  ;;  %v3721_v42 = vld [vmem:[%s6169_s5 + $0x4c8] sm:$0xff] }
 0x2ce   : > { %1735 = vmatprep.subr.mxu0 %v3591_v43  ;;  %v3720_v43 = vld [vmem:[%s6169_s5 + $0x4c0] sm:$0xff] }
 0x2cf   : > { %1736 = vmatpush1.msra.mxu0 %v3590_v44  ;;  %v3652_v44 = vld [vmem:[%s6168_s4 + $0x60] sm:$0xff] }
 0x2d0   : > { %1737 = vmatprep.subr.mxu0 %v3589_v45  ;;  %v3719_v45 = vld [vmem:[%s6169_s5 + $0x4b8] sm:$0xff] }
 0x2d1   : > { %1738 = vmatpush1.msra.mxu0 %v3588_v46  ;;  %v3653_v46 = vld [vmem:[%s6168_s4 + $0x68] sm:$0xff] }
 0x2d2   : > { %1739 = vmatprep.subr.mxu0 %v3587_v47  ;;  %v3718_v47 = vld [vmem:[%s6169_s5 + $0x4b0] sm:$0xff] }
 0x2d3   : > { %1740 = vmatpush1.msra.mxu0 %v3586_v48  ;;  %v3717_v48 = vld [vmem:[%s6169_s5 + $0x4a8] sm:$0xff] }
 0x2d4   : > { %1741 = vmatprep.subr.mxu0 %v3585_v50  ;;  %v3716_v50 = vld [vmem:[%s6169_s5 + $0x4a0] sm:$0xff] }
 0x2d5   : > { %1742 = vmatpush1.msra.mxu0 %v3584_v51  ;;  %v3654_v51 = vld [vmem:[%s6168_s4 + $0x70] sm:$0xff] }
 0x2d6   : > { %1970 = vmatprep.subr.mxu0 %v3647_v54  ;;  %v3715_v54 = vld [vmem:[%s6169_s5 + $0x498] sm:$0xff] }
 0x376   : > { %v5015_v55 = vpop.f32.mrf.mxu0 }
 0x378   : > { %v5020_v59 = vpop.f32.mrf.mxu0 }
 0x379   : > { %1776 = vmatmul.mubr.f32.vlgmr.msra.gmra.mxu0 %v5020_v59  ;;  %1889 = vmatmul.mubr.f32.vlgmr.msra.gmra.mxu1 %v5020_v59 }
 0x37a   : > { %4287 = vmatpush3.msra.mxu1 %v4869_v7  ;;  %1971 = vmatpush1.msra.mxu0 %v3646_v57  ;;  %v5046_v1 = vpop.f32.mrf.mxu0  ;;  %v3714_v57 = vld [vmem:[%s6169_s5 + $0x490] sm:$0xff] }
 0x37b   : > { %4288 = vmatprep.subr.mxu1 %v4871_v9  ;;  %1972 = vmatprep.subr.mxu0 %v3645_v60  ;;  %v3712_v60 = vld [vmem:[%s6169_s5 + $0x480] sm:$0xff] }
 0x37c   : > { %4289 = vmatpush3.msra.mxu1 %v4871_v9  ;;  %1781 = vmatprep.mubr.f32.mxu0 %v4343_v52  ;;  %v5059_v4 = vpop.f32.mrf.mxu0 }
 0x37d   : > { %1894 = vmatprep.mubr.f32.mxu1 %v4343_v52  ;;  %1973 = vmatpush1.msra.mxu0 %v3644_v61  ;;  %v3711_v61 = vld [vmem:[%s6169_s5 + $0x478] sm:$0xff] }
 0x37e   : > { %4290 = vmatprep.subr.mxu1 %v4876_v10  ;;  %1782 = vmatmul.mubr.f32.gmra.mxu0 %v5015_v55  ;;  %v5081_v8 = vpop.f32.mrf.mxu0 }
 0x37f   : > { %1895 = vmatmul.mubr.f32.gmra.mxu1 %v5015_v55  ;;  %1974 = vmatprep.subr.mxu0 %v3643_v62  ;;  %v3710_v62 = vld [vmem:[%s6169_s5 + $0x470] sm:$0xff] }
 0x380   : > { %4291 = vmatpush3.msra.mxu1 %v4876_v10  ;;  %1975 = vmatpush1.msra.mxu0 %v3642_v63  ;;  %v5098_v15 = vpop.f32.mrf.mxu0  ;;  %v3709_v63 = vld [vmem:[%s6169_s5 + $0x468] sm:$0xff] }
 0x381   : > { %4292 = vmatprep.subr.mxu1 %v4880_v11  ;;  %1976 = vmatprep.subr.mxu0 %v3641_v0  ;;  %v3708_v0 = vld [vmem:[%s6169_s5 + $0x460] sm:$0xff] }
 0x382   : > { %4293 = vmatpush3.msra.mxu1 %v4880_v11  ;;  %1787 = vmatprep.mubr.f32.mxu0 %v4343_v52  ;;  %v5117_v20 = vpop.f32.mrf.mxu0 }
 0x383   : > { %1900 = vmatprep.mubr.f32.mxu1 %v4343_v52  ;;  %1977 = vmatpush1.msra.mxu0 %v3640_v2  ;;  %v3706_v2 = vld [vmem:[%s6169_s5 + $0x450] sm:$0xff] }
 0x384   : > { %1788 = vmatmul.mubr.f32.gmra.mxu0 %v5059_v4  ;;  %1901 = vmatmul.mubr.f32.gmra.mxu1 %v5059_v4  ;;  %v5134_v25 = vpop.f32.mrf.mxu0 }
 0x385   : > { %1978 = vmatprep.subr.mxu0 %v3639_v3  ;;  %1793 = vmatprep.mubr.f32.mxu0 %v4343_v52  ;;  %v3705_v3 = vld [vmem:[%s6169_s5 + $0x448] sm:$0xff] }
 0x386   : > { %1979 = vmatpush1.msra.mxu0 %v3638_v56  ;;  %1906 = vmatprep.mubr.f32.mxu1 %v4343_v52  ;;  %v3703_v56 = vld [vmem:[%s6169_s5 + $0x438] sm:$0xff] }
 0x387   : > { %1980 = vmatprep.subr.mxu0 %v3637_v49  ;;  %2432 = vmatprep.subr.mxu1 %v3727_v5  ;;  %v3702_v49 = vld [vmem:[%s6169_s5 + $0x430] sm:$0xff]  ;;  %v3701_v5 = vld [vmem:[%s6169_s5 + $0x428] sm:$0xff] }
 0x388   : > { %1981 = vmatpush1.msra.mxu0 %v3636_v6  ;;  %1907 = vmatmul.mubr.f32.gmra.mxu1 %v5046_v1  ;;  %v3700_v6 = vld [vmem:[%s6169_s5 + $0x420] sm:$0xff] }
 0x389   : > { %1794 = vmatmul.mubr.f32.gmra.mxu0 %v5046_v1  ;;  %1982 = vmatprep.subr.mxu0 %v3635_v58  ;;  %v3699_v58 = vld [vmem:[%s6169_s5 + $0x418] sm:$0xff] }
 0x38a   : > { %1983 = vmatpush1.msra.mxu0 %v3634_v53  ;;  %1799 = vmatprep.mubr.f32.mxu0 %v4343_v52  ;;  %v3697_v53 = vld [vmem:[%s6169_s5 + $0x408] sm:$0xff] }
 0x38b   : > { %1984 = vmatprep.subr.mxu0 %v3633_v12  ;;  %1912 = vmatprep.mubr.f32.mxu1 %v4343_v52  ;;  %v3696_v12 = vld [vmem:[%s6169_s5 + $0x400] sm:$0xff] }
 0x38c   : > { %1985 = vmatpush1.msra.mxu0 %v3632_v13  ;;  %1913 = vmatmul.mubr.f32.gmra.mxu1 %v5098_v15  ;;  %v3695_v13 = vld [vmem:[%s6169_s5 + $0x3f8] sm:$0xff] }
 0x38d   : > { %1800 = vmatmul.mubr.f32.gmra.mxu0 %v5098_v15  ;;  %1986 = vmatprep.subr.mxu0 %v3631_v14  ;;  %v3694_v14 = vld [vmem:[%s6169_s5 + $0x3f0] sm:$0xff] }
 0x38e   : > { %1987 = vmatpush1.msra.mxu0 %v3630_v16  ;;  %1805 = vmatprep.mubr.f32.mxu0 %v4343_v52  ;;  %v3692_v16 = vld [vmem:[%s6169_s5 + $0x3e0] sm:$0xff] }
 0x38f   : > { %1988 = vmatprep.subr.mxu0 %v3629_v17  ;;  %1918 = vmatprep.mubr.f32.mxu1 %v4343_v52  ;;  %v3691_v17 = vld [vmem:[%s6169_s5 + $0x3d8] sm:$0xff] }
 0x390   : > { %1989 = vmatpush1.msra.mxu0 %v3628_v18  ;;  %1919 = vmatmul.mubr.f32.gmra.mxu1 %v5081_v8  ;;  %v3690_v18 = vld [vmem:[%s6169_s5 + $0x3d0] sm:$0xff] }
 0x391   : > { %1806 = vmatmul.mubr.f32.gmra.mxu0 %v5081_v8  ;;  %1990 = vmatprep.subr.mxu0 %v3627_v19  ;;  %v3689_v19 = vld [vmem:[%s6169_s5 + $0x3c8] sm:$0xff] }
 0x392   : > { %1991 = vmatpush1.msra.mxu0 %v3626_v21  ;;  %1811 = vmatprep.mubr.f32.mxu0 %v4343_v52  ;;  %v3687_v21 = vld [vmem:[%s6169_s5 + $0x3b8] sm:$0xff] }
 0x393   : > { %1992 = vmatprep.subr.mxu0 %v3625_v22  ;;  %1924 = vmatprep.mubr.f32.mxu1 %v4343_v52  ;;  %v3686_v22 = vld [vmem:[%s6169_s5 + $0x3b0] sm:$0xff] }
 0x394   : > { %1993 = vmatpush1.msra.mxu0 %v3624_v23  ;;  %1925 = vmatmul.mubr.f32.gmra.mxu1 %v5134_v25  ;;  %v3685_v23 = vld [vmem:[%s6169_s5 + $0x3a8] sm:$0xff] }
 0x395   : > { %1812 = vmatmul.mubr.f32.gmra.mxu0 %v5134_v25  ;;  %1994 = vmatprep.subr.mxu0 %v3623_v24  ;;  %v3684_v24 = vld [vmem:[%s6169_s5 + $0x3a0] sm:$0xff] }
 0x396   : > { %1995 = vmatpush1.msra.mxu0 %v3622_v26  ;;  %1817 = vmatprep.mubr.f32.mxu0 %v4343_v52  ;;  %v3682_v26 = vld [vmem:[%s6169_s5 + $0x390] sm:$0xff] }
 0x397   : > { %1996 = vmatprep.subr.mxu0 %v3621_v27  ;;  %1930 = vmatprep.mubr.f32.mxu1 %v4343_v52  ;;  %v3681_v27 = vld [vmem:[%s6169_s5 + $0x388] sm:$0xff] }
 0x398   : > { %1997 = vmatpush1.msra.mxu0 %v3620_v28  ;;  %1931 = vmatmul.mubr.f32.gmra.mxu1 %v5117_v20  ;;  %v3680_v28 = vld [vmem:[%s6169_s5 + $0x380] sm:$0xff] }
 0x399   : > { %1818 = vmatmul.mubr.f32.gmra.mxu0 %v5117_v20  ;;  %1998 = vmatprep.subr.mxu0 %v3619_v29  ;;  %v3679_v29 = vld [vmem:[%s6169_s5 + $0x378] sm:$0xff] }
 0x39a   : > { %1999 = vmatpush1.msra.mxu0 %v3618_v30  ;;  %2034 = vmatprep.mubr.f32.mxu0 %v4343_v52  ;;  %v3678_v30 = vld [vmem:[%s6169_s5 + $0x370] sm:$0xff] }
 0x39b   : > { %2000 = vmatprep.subr.mxu0 %v3617_v31  ;;  %4294 = vmatprep.mubr.msk.f32.mxu1 %vm1516_vm2, %v3648_v32  ;;  %v3677_v31 = vld [vmem:[%s6169_s5 + $0x368] sm:$0xff]  ;;  %v3676_v32 = vld [vmem:[%s6169_s5 + $0x360] sm:$0xff] }
 0x39c   : > { %2001 = vmatpush1.msra.mxu0 %v3616_v33  ;;  %4295 = vmatmul.mubr.msk.f32.vlgmr.msra.gmra.mxu1 %vm1516_vm2, %v3649_v34  ;;  %v3675_v33 = vld [vmem:[%s6169_s5 + $0x358] sm:$0xff]  ;;  %v3674_v34 = vld [vmem:[%s6169_s5 + $0x350] sm:$0xff] }
 0x39d   : > { %2035 = vmatmul.mubr.f32.vlgmr.msra.gmra.mxu0 %v5020_v59  ;;  %2433 = vmatpush1.msra.mxu1 %v3726_v35  ;;  %v3713_v59 = vld [vmem:[%s6169_s5 + $0x488] sm:$0xff] }
 0x39e   : > { %2434 = vmatprep.subr.mxu1 %v3725_v36  ;;  %2040 = vmatprep.mubr.f32.mxu0 %v4343_v52  ;;  %v3673_v35 = vld [vmem:[%s6169_s5 + $0x348] sm:$0xff]  ;;  %v3672_v36 = vld [vmem:[%s6169_s5 + $0x340] sm:$0xff] }
 0x39f   : > { %2435 = vmatpush1.msra.mxu1 %v3724_v37  ;;  %4297 = vmatprep.mubr.msk.f32.mxu1 %vm1516_vm2, %v3650_v38  ;;  %v3671_v37 = vld [vmem:[%s6169_s5 + $0x338] sm:$0xff]  ;;  %v3670_v38 = vld [vmem:[%s6169_s5 + $0x330] sm:$0xff] }
 0x3a0   : > { %2436 = vmatprep.subr.mxu1 %v3723_v39  ;;  %4298 = vmatmul.mubr.msk.f32.gmra.mxu1 %vm1516_vm2, %v3651_v40  ;;  %v3669_v39 = vld [vmem:[%s6169_s5 + $0x328] sm:$0xff]  ;;  %v3668_v40 = vld [vmem:[%s6169_s5 + $0x320] sm:$0xff] }
 0x3a1   : > { %2041 = vmatmul.mubr.f32.gmra.mxu0 %v5015_v55  ;;  %2437 = vmatpush1.msra.mxu1 %v3722_v41  ;;  %v3655_v55 = vld [vmem:[%s6168_s4 + $0x78] sm:$0xff] }
 0x3a2   : > { %2438 = vmatprep.subr.mxu1 %v3721_v42  ;;  %2046 = vmatprep.mubr.f32.mxu0 %v4343_v52  ;;  %v3667_v41 = vld [vmem:[%s6169_s5 + $0x318] sm:$0xff]  ;;  %v3666_v42 = vld [vmem:[%s6169_s5 + $0x310] sm:$0xff] }
 0x3a3   : > { %2439 = vmatpush1.msra.mxu1 %v3720_v43  ;;  %4300 = vmatprep.mubr.msk.f32.mxu1 %vm1516_vm2, %v3652_v44  ;;  %v3665_v43 = vld [vmem:[%s6169_s5 + $0x308] sm:$0xff]  ;;  %v3664_v44 = vld [vmem:[%s6169_s5 + $0x300] sm:$0xff] }
 0x3a4   : > { %2440 = vmatprep.subr.mxu1 %v3719_v45  ;;  %4301 = vmatmul.mubr.msk.f32.gmra.mxu1 %vm1516_vm2, %v3653_v46  ;;  %v3759_v45 = vld [vmem:[%s6169_s5 + $0x5f8] sm:$0xff] }
 0x3a5   : > { %2047 = vmatmul.mubr.f32.gmra.mxu0 %v5059_v4  ;;  %2441 = vmatpush1.msra.mxu1 %v3718_v47  ;;  %v3704_v4 = vld [vmem:[%s6169_s5 + $0x440] sm:$0xff] }
 0x3a6   : > { %2442 = vmatprep.subr.mxu1 %v3717_v48  ;;  %2052 = vmatprep.mubr.f32.mxu0 %v4343_v52 }
 0x3a7   : > { %2443 = vmatpush1.msra.mxu1 %v3716_v50  ;;  %4303 = vmatprep.mubr.msk.f32.mxu1 %vm1516_vm2, %v3654_v51 }
 0x3a8   : > { %2444 = vmatprep.subr.mxu1 %v3715_v54  ;;  %4304 = vmatmul.mubr.msk.f32.gmra.mxu1 %vm1516_vm2, %v3655_v55 }
 0x3a9   : > { %2053 = vmatmul.mubr.f32.gmra.mxu0 %v5046_v1  ;;  %2445 = vmatpush1.msra.mxu1 %v3714_v57  ;;  %v3707_v1 = vld [vmem:[%s6169_s5 + $0x458] sm:$0xff] }
 0x3aa   : > { %2446 = vmatprep.subr.mxu1 %v3713_v59  ;;  %2058 = vmatprep.mubr.f32.mxu0 %v4343_v52 }
 0x3ab   : > { %2447 = vmatpush1.msra.mxu1 %v3712_v60  ;;  %2496 = vmatprep.mubr.f32.mxu1 %v4343_v52 }
 0x3ac   : > { %2448 = vmatprep.subr.mxu1 %v3711_v61  ;;  %2270 = vmatprep.subr.mxu0 %v3695_v13 }
 0x3ad   : > { %2059 = vmatmul.mubr.f32.gmra.mxu0 %v5098_v15  ;;  %2449 = vmatpush1.msra.mxu1 %v3710_v62  ;;  %v3693_v15 = vld [vmem:[%s6169_s5 + $0x3e8] sm:$0xff] }
 0x3ae   : > { %2450 = vmatprep.subr.mxu1 %v3709_v63  ;;  %2064 = vmatprep.mubr.f32.mxu0 %v4343_v52 }
 0x3af   : > { %2451 = vmatpush1.msra.mxu1 %v3708_v0  ;;  %2271 = vmatpush1.msra.mxu0 %v3694_v14 }
 0x3b0   : > { %2452 = vmatprep.subr.mxu1 %v3707_v1  ;;  %2272 = vmatprep.subr.mxu0 %v3693_v15 }
 0x3b1   : > { %2065 = vmatmul.mubr.f32.gmra.mxu0 %v5081_v8  ;;  %2453 = vmatpush1.msra.mxu1 %v3706_v2  ;;  %v3698_v8 = vld [vmem:[%s6169_s5 + $0x410] sm:$0xff] }
 0x3b2   : > { %2454 = vmatprep.subr.mxu1 %v3705_v3  ;;  %2070 = vmatprep.mubr.f32.mxu0 %v4343_v52 }
 0x3b3   : > { %2455 = vmatpush1.msra.mxu1 %v3704_v4  ;;  %2273 = vmatpush1.msra.mxu0 %v3692_v16 }
 0x3b4   : > { %2456 = vmatprep.subr.mxu1 %v3703_v56  ;;  %2274 = vmatprep.subr.mxu0 %v3691_v17 }
 0x3b5   : > { %2071 = vmatmul.mubr.f32.gmra.mxu0 %v5134_v25  ;;  %2457 = vmatpush1.msra.mxu1 %v3702_v49  ;;  %v3683_v25 = vld [vmem:[%s6169_s5 + $0x398] sm:$0xff] }
 0x3b6   : > { %2458 = vmatprep.subr.mxu1 %v3701_v5  ;;  %2076 = vmatprep.mubr.f32.mxu0 %v4343_v52 }
 0x3b7   : > { %2459 = vmatpush1.msra.mxu1 %v3700_v6  ;;  %2275 = vmatpush1.msra.mxu0 %v3690_v18 }
 0x3b8   : > { %2460 = vmatprep.subr.mxu1 %v3699_v58  ;;  %2276 = vmatprep.subr.mxu0 %v3689_v19 }
 0x3b9   : > { %2077 = vmatmul.mubr.f32.gmra.mxu0 %v5117_v20  ;;  %2461 = vmatpush1.msra.mxu1 %v3698_v8  ;;  %v3688_v20 = vld [vmem:[%s6169_s5 + $0x3c0] sm:$0xff] }
 0x3ba   : > { %2462 = vmatprep.subr.mxu1 %v3697_v53  ;;  %2334 = vmatprep.mubr.f32.mxu0 %v4343_v52 }
 0x3bb   : > { %2463 = vmatpush1.msra.mxu1 %v3696_v12  ;;  %2277 = vmatpush1.msra.mxu0 %v3688_v20 }
 0x3bc   : > { %4306 = vmatprep.subr.mxu1 %v4869_v7  ;;  %2278 = vmatprep.subr.mxu0 %v3687_v21 }
 0x3bd   : > { %2279 = vmatpush1.msra.mxu0 %v3686_v22 }
 0x3be   : > { %2280 = vmatprep.subr.mxu0 %v3685_v23 }
 0x3bf   : > { %2281 = vmatpush1.msra.mxu0 %v3684_v24 }
 0x3c0   : > { %2282 = vmatprep.subr.mxu0 %v3683_v25 }
 0x3c1   : > { %2283 = vmatpush1.msra.mxu0 %v3682_v26 }
 0x3c2   : > { %2284 = vmatprep.subr.mxu0 %v3681_v27 }
 0x3c3   : > { %2285 = vmatpush1.msra.mxu0 %v3680_v28 }
 0x3c4   : > { %2286 = vmatprep.subr.mxu0 %v3679_v29 }
 0x3c5   : > { %2287 = vmatpush1.msra.mxu0 %v3678_v30 }
 0x3c6   : > { %2288 = vmatprep.subr.mxu0 %v3677_v31 }
 0x3c7   : > { %2289 = vmatpush1.msra.mxu0 %v3676_v32 }
 0x3c8   : > { %2290 = vmatprep.subr.mxu0 %v3675_v33 }
 0x3c9   : > { %2291 = vmatpush1.msra.mxu0 %v3674_v34 }
 0x3ca   : > { %2292 = vmatprep.subr.mxu0 %v3673_v35 }
 0x3cb   : > { %2293 = vmatpush1.msra.mxu0 %v3672_v36 }
 0x3cc   : > { %2294 = vmatprep.subr.mxu0 %v3671_v37  ;;  %v3758_v37 = vld [vmem:[%s6169_s5 + $0x5f0] sm:$0xff] }
 0x3cd   : > { %2295 = vmatpush1.msra.mxu0 %v3670_v38 }
 0x3ce   : > { %2296 = vmatprep.subr.mxu0 %v3669_v39 }
 0x3cf   : > { %2297 = vmatpush1.msra.mxu0 %v3668_v40  ;;  %v3757_v40 = vld [vmem:[%s6169_s5 + $0x5e8] sm:$0xff] }
 0x3d0   : > { %2298 = vmatprep.subr.mxu0 %v3667_v41 }
 0x3d1   : > { %2299 = vmatpush1.msra.mxu0 %v3666_v42 }
 0x3d2   : > { %2300 = vmatprep.subr.mxu0 %v3665_v43  ;;  %v3756_v43 = vld [vmem:[%s6169_s5 + $0x5e0] sm:$0xff] }
 0x3d3   : > { %2301 = vmatpush1.msra.mxu0 %v3664_v44 }
 0x3d4   : > { %2594 = vmatprep.subr.mxu0 %v3759_v45 }
 0x439   : > { %v1777_v46 = vpop.f32.mrf.mxu0  ;;  %v1890_v47 = vpop.f32.mrf.mxu1 }
 0x43a   : > { %v1891_v48 = vadd.f32 %v1890_v47, %v1777_v46  ;;  %v3755_v46 = vld [vmem:[%s6169_s5 + $0x5d8] sm:$0xff]  ;;  %v3754_v47 = vld [vmem:[%s6169_s5 + $0x5d0] sm:$0xff] }
 0x43b   : > { %v1779_v50 = vpop.f32.mrf.mxu0  ;;  %v1892_v51 = vpop.f32.mrf.mxu1 }
 0x43c   : > { %v1893_v54 = vadd.f32 %v1892_v51, %v1779_v50 }
 0x43e   : > { %v1783_v55 = vpop.f32.mrf.mxu0 }
 0x43f   : > { %v1896_v57 = vpop.f32.mrf.mxu1 }
 0x440   : > { %v1897_v59 = vadd.f32 %v1896_v57, %v1783_v55  ;;  %v1785_v60 = vpop.f32.mrf.mxu0  ;;  %v3752_v55 = vld [vmem:[%s6169_s5 + $0x5c0] sm:$0xff] }
 0x441   : > { %v1898_v61 = vpop.f32.mrf.mxu1 }
 0x442   : > { %v1899_v62 = vadd.f32 %v1898_v61, %v1785_v60 }
 0x444   : > { %v1789_v63 = vpop.f32.mrf.mxu0  ;;  %v1902_v0 = vpop.f32.mrf.mxu1 }
 0x445   : > { %v5407_v1 = vadd.f32 %v1902_v0, %v1789_v63  ;;  %v3749_v63 = vld [vmem:[%s6169_s5 + $0x5a8] sm:$0xff] }
 0x446   : > { %v1791_v2 = vpop.f32.mrf.mxu0  ;;  %v1904_v3 = vpop.f32.mrf.mxu1 }
 0x447   : > { %v5409_v4 = vadd.f32 %v1904_v3, %v1791_v2  ;;  %v3747_v3 = vld [vmem:[%s6169_s5 + $0x598] sm:$0xff] }
 0x448   : > { %v1908_v56 = vpop.f32.mrf.mxu1 }
 0x449   : > { %v1795_v49 = vpop.f32.mrf.mxu0 }
 0x44a   : > { %v5411_v5 = vadd.f32 %v1908_v56, %v1795_v49  ;;  %v1910_v6 = vpop.f32.mrf.mxu1  ;;  %v3746_v49 = vld [vmem:[%s6169_s5 + $0x590] sm:$0xff] }
 0x44b   : > { %v1797_v58 = vpop.f32.mrf.mxu0 }
 0x44c   : > { %v5413_v8 = vadd.f32 %v1910_v6, %v1797_v58  ;;  %v1914_v53 = vpop.f32.mrf.mxu1  ;;  %v3745_v6 = vld [vmem:[%s6169_s5 + $0x588] sm:$0xff] }
 0x44d   : > { %v1801_v12 = vpop.f32.mrf.mxu0 }
 0x44e   : > { %v5415_v13 = vadd.f32 %v1914_v53, %v1801_v12  ;;  %v1916_v14 = vpop.f32.mrf.mxu1  ;;  %v3743_v12 = vld [vmem:[%s6169_s5 + $0x578] sm:$0xff] }
 0x44f   : > { %v1803_v15 = vpop.f32.mrf.mxu0 }
 0x450   : > { %v5417_v16 = vadd.f32 %v1916_v14, %v1803_v15  ;;  %v1920_v17 = vpop.f32.mrf.mxu1  ;;  %v3742_v15 = vld [vmem:[%s6169_s5 + $0x570] sm:$0xff] }
 0x451   : > { %v1807_v18 = vpop.f32.mrf.mxu0 }
 0x452   : > { %v5419_v19 = vadd.f32 %v1920_v17, %v1807_v18  ;;  %v1922_v20 = vpop.f32.mrf.mxu1  ;;  %v3741_v17 = vld [vmem:[%s6169_s5 + $0x568] sm:$0xff] }
 0x453   : > { %v1809_v21 = vpop.f32.mrf.mxu0 }
 0x454   : > { %v5421_v22 = vadd.f32 %v1922_v20, %v1809_v21  ;;  %v1926_v23 = vpop.f32.mrf.mxu1  ;;  %v3740_v20 = vld [vmem:[%s6169_s5 + $0x560] sm:$0xff] }
 0x455   : > { %v1813_v24 = vpop.f32.mrf.mxu0 }
 0x456   : > { %v5423_v25 = vadd.f32 %v1926_v23, %v1813_v24  ;;  %v1928_v26 = vpop.f32.mrf.mxu1 }
 0x457   : > { %v1815_v27 = vpop.f32.mrf.mxu0 }
 0x458   : > { %v5425_v28 = vadd.f32 %v1928_v26, %v1815_v27  ;;  %v1932_v29 = vpop.f32.mrf.mxu1  ;;  %v3738_v26 = vld [vmem:[%s6169_s5 + $0x550] sm:$0xff]  ;;  %v3737_v27 = vld [vmem:[%s6169_s5 + $0x548] sm:$0xff] }
 0x459   : > { %v1819_v30 = vpop.f32.mrf.mxu0 }
 0x45a   : > { %v5427_v31 = vadd.f32 %v1932_v29, %v1819_v30  ;;  %v1934_v32 = vpop.f32.mrf.mxu1  ;;  %v3736_v30 = vld [vmem:[%s6169_s5 + $0x540] sm:$0xff] }
 0x45b   : > { %v1821_v33 = vpop.f32.mrf.mxu0 }
 0x45c   : > { %v5429_v34 = vadd.f32 %v1934_v32, %v1821_v33  ;;  %v5431_v35 = vpop.f32.mrf.mxu1 }
 0x45d   : > { %v2036_v36 = vpop.f32.mrf.mxu0 }
 0x45e   : > { %v5436_v38 = vadd.f32 %v2036_v36, %v1891_v48  ;;  %v5438_v39 = vpop.f32.mrf.mxu1 }
 0x45f   : > { %v2038_v41 = vpop.f32.mrf.mxu0  ;;  %2335 = vmatmul.mubr.f32.vlgmr.msra.gmra.mxu0 %v5438_v39  ;;  %2497 = vmatmul.mubr.f32.vlgmr.msra.gmra.mxu1 %v5438_v39 }
 0x460   : > { %v5445_v42 = vadd.f32 %v2038_v41, %v1893_v54  ;;  %4307 = vmatpush3.msra.mxu1 %v4869_v7  ;;  %2595 = vmatpush1.msra.mxu0 %v3758_v37  ;;  %v5470_v50 = vpop.f32.mrf.mxu1  ;;  %v3734_v37 = vld [vmem:[%s6169_s5 + $0x530] sm:$0xff]  ;;  %v3732_v41 = vld [vmem:[%s6169_s5 + $0x520] sm:$0xff] }
 0x461   : > { %v2042_v44 = vpop.f32.mrf.mxu0  ;;  %4308 = vmatprep.subr.mxu1 %v4871_v9  ;;  %2596 = vmatprep.subr.mxu0 %v3757_v40  ;;  %v3733_v40 = vld [vmem:[%s6169_s5 + $0x528] sm:$0xff] }
 0x462   : > { %v5452_v45 = vadd.f32 %v2042_v44, %v1897_v59  ;;  %4309 = vmatpush3.msra.mxu1 %v4871_v9  ;;  %2340 = vmatprep.mubr.f32.mxu0 %v4343_v52  ;;  %v3753_v9 = vld [vmem:[%s6169_s5 + $0x5c8] sm:$0xff]  ;;  %v5489_v60 = vpop.f32.mrf.mxu1 }
 0x463   : > { %v2044_v7 = vpop.f32.mrf.mxu0  ;;  %2502 = vmatprep.mubr.f32.mxu1 %v4343_v52  ;;  %2597 = vmatpush1.msra.mxu0 %v3756_v43  ;;  %v3731_v43 = vld [vmem:[%s6169_s5 + $0x518] sm:$0xff]  ;;  %v3729_v44 = vld [vmem:[%s6169_s5 + $0x508] sm:$0xff] }
 0x464   : > { %v5463_v48 = vadd.f32 %v2044_v7, %v1899_v62  ;;  %4310 = vmatprep.subr.mxu1 %v4876_v10  ;;  %2341 = vmatmul.mubr.f32.gmra.mxu0 %v5431_v35  ;;  %v3750_v62 = vld [vmem:[%s6169_s5 + $0x5b0] sm:$0xff]  ;;  %v3728_v7 = vld [vmem:[%s6169_s5 + $0x500] sm:$0xff] }
 0x465   : > { %2503 = vmatmul.mubr.f32.gmra.mxu1 %v5431_v35  ;;  %2598 = vmatprep.subr.mxu0 %v3755_v46  ;;  %v2048_v51 = vpop.f32.mrf.mxu0  ;;  %v3760_v46 = vld [vmem:[%s6168_s4 + $0x80] sm:$0xff] }
 0x466   : > { %4311 = vmatpush3.msra.mxu1 %v4876_v10  ;;  %v5475_v54 = vadd.f32 %v2048_v51, %v5407_v1  ;;  %2599 = vmatpush1.msra.mxu0 %v3754_v47  ;;  %v3751_v10 = vld [vmem:[%s6169_s5 + $0x5b8] sm:$0xff]  ;;  %v3748_v1 = vld [vmem:[%s6169_s5 + $0x5a0] sm:$0xff]  ;;  %v3761_v47 = vld [vmem:[%s6168_s4 + $0x88] sm:$0xff] }
 0x467   : > { %4312 = vmatprep.subr.mxu1 %v4880_v11  ;;  %2600 = vmatprep.subr.mxu0 %v3753_v9  ;;  %v2050_v57 = vpop.f32.mrf.mxu0  ;;  %v3762_v9 = vld [vmem:[%s6168_s4 + $0x90] sm:$0xff]  ;;  %v3763_v51 = vld [vmem:[%s6168_s4 + $0x98] sm:$0xff] }
 0x468   : > { %4313 = vmatpush3.msra.mxu1 %v4880_v11  ;;  %v5483_v59 = vadd.f32 %v2050_v57, %v5409_v4  ;;  %2346 = vmatprep.mubr.f32.mxu0 %v4343_v52  ;;  %v5514_v4 = vpop.f32.mrf.mxu1  ;;  %v3766_v57 = vld [vmem:[%s6168_s4 + $0xb0] sm:$0xff] }
 0x469   : > { %2508 = vmatprep.mubr.f32.mxu1 %v4343_v52  ;;  %2601 = vmatpush1.msra.mxu0 %v3752_v55  ;;  %v2054_v61 = vpop.f32.mrf.mxu0  ;;  %v3764_v55 = vld [vmem:[%s6168_s4 + $0xa0] sm:$0xff] }
 0x46a   : > { %2347 = vmatmul.mubr.f32.gmra.mxu0 %v5489_v60  ;;  %2509 = vmatmul.mubr.f32.gmra.mxu1 %v5489_v60  ;;  %v5498_v11 = vadd.f32 %v2054_v61, %v5411_v5  ;;  %v3838_v61 = vld [vmem:[%s6169_s5 + $0x7f0] sm:$0xff] }
 0x46b   : > { %2602 = vmatprep.subr.mxu0 %v3751_v10  ;;  %v2056_v0 = vpop.f32.mrf.mxu0  ;;  %2352 = vmatprep.mubr.f32.mxu0 %v4343_v52  ;;  %v3839_v10 = vld [vmem:[%s6169_s5 + $0x7f8] sm:$0xff] }
 0x46c   : > { %2603 = vmatpush1.msra.mxu0 %v3750_v62  ;;  %v5508_v2 = vadd.f32 %v2056_v0, %v5413_v8  ;;  %2514 = vmatprep.mubr.f32.mxu1 %v4343_v52  ;;  %v3744_v8 = vld [vmem:[%s6169_s5 + $0x580] sm:$0xff]  ;;  %v3805_v62 = vld [vmem:[%s6169_s5 + $0x6e8] sm:$0xff] }
 0x46d   : > { %2604 = vmatprep.subr.mxu0 %v3749_v63  ;;  %v2060_v56 = vpop.f32.mrf.mxu0  ;;  %3056 = vmatprep.subr.mxu1 %v3839_v10  ;;  %v3837_v63 = vld [vmem:[%s6169_s5 + $0x7e8] sm:$0xff]  ;;  %v3804_v0 = vld [vmem:[%s6169_s5 + $0x6e0] sm:$0xff]  ;;  %v3783_v10 = vld [vmem:[%s6169_s5 + $0x638] sm:$0xff] }
 0x46e   : > { %2605 = vmatpush1.msra.mxu0 %v3748_v1  ;;  %2515 = vmatmul.mubr.f32.gmra.mxu1 %v5470_v50  ;;  %v5521_v5 = vadd.f32 %v2060_v56, %v5415_v13  ;;  %v5537_v13 = vpop.f32.mrf.mxu1  ;;  %v3836_v1 = vld [vmem:[%s6169_s5 + $0x7e0] sm:$0xff]  ;;  %v3802_v56 = vld [vmem:[%s6169_s5 + $0x6d0] sm:$0xff] }
 0x46f   : > { %2353 = vmatmul.mubr.f32.gmra.mxu0 %v5470_v50  ;;  %2606 = vmatprep.subr.mxu0 %v3747_v3  ;;  %v2062_v58 = vpop.f32.mrf.mxu0  ;;  %v3803_v3 = vld [vmem:[%s6169_s5 + $0x6d8] sm:$0xff] }
 0x470   : > { %2607 = vmatpush1.msra.mxu0 %v3746_v49  ;;  %v5531_v53 = vadd.f32 %v2062_v58, %v5417_v16  ;;  %2358 = vmatprep.mubr.f32.mxu0 %v4343_v52  ;;  %v5562_v23 = vpop.f32.mrf.mxu1  ;;  %v3834_v49 = vld [vmem:[%s6169_s5 + $0x7d0] sm:$0xff]  ;;  %v3833_v58 = vld [vmem:[%s6169_s5 + $0x7c8] sm:$0xff] }
 0x471   : > { %2608 = vmatprep.subr.mxu0 %v3745_v6  ;;  %2520 = vmatprep.mubr.f32.mxu1 %v4343_v52  ;;  %v2066_v14 = vpop.f32.mrf.mxu0  ;;  %v3801_v6 = vld [vmem:[%s6169_s5 + $0x6c8] sm:$0xff] }
 0x472   : > { %2609 = vmatpush1.msra.mxu0 %v3744_v8  ;;  %2521 = vmatmul.mubr.f32.gmra.mxu1 %v5537_v13  ;;  %v5545_v16 = vadd.f32 %v2066_v14, %v5419_v19  ;;  %v3739_v19 = vld [vmem:[%s6169_s5 + $0x558] sm:$0xff]  ;;  %v2228_v33 = vpop.f32.mrf.mxu1  ;;  %v3800_v8 = vld [vmem:[%s6169_s5 + $0x6c0] sm:$0xff] }
 0x473   : > { %2359 = vmatmul.mubr.f32.gmra.mxu0 %v5537_v13  ;;  %2610 = vmatprep.subr.mxu0 %v3743_v12  ;;  %v2068_v18 = vpop.f32.mrf.mxu0  ;;  %v3832_v12 = vld [vmem:[%s6169_s5 + $0x7c0] sm:$0xff]  ;;  %v3831_v14 = vld [vmem:[%s6169_s5 + $0x7b8] sm:$0xff] }
 0x474   : > { %2611 = vmatpush1.msra.mxu0 %v3742_v15  ;;  %v5555_v21 = vadd.f32 %v2068_v18, %v5421_v22  ;;  %2364 = vmatprep.mubr.f32.mxu0 %v4343_v52  ;;  %v3798_v15 = vld [vmem:[%s6169_s5 + $0x6b0] sm:$0xff]  ;;  %v3797_v18 = vld [vmem:[%s6169_s5 + $0x6a8] sm:$0xff] }
 0x475   : > { %2612 = vmatprep.subr.mxu0 %v3741_v17  ;;  %2526 = vmatprep.mubr.f32.mxu1 %v4343_v52  ;;  %v2072_v24 = vpop.f32.mrf.mxu0  ;;  %v3830_v17 = vld [vmem:[%s6169_s5 + $0x7b0] sm:$0xff] }
 0x476   : > { %2613 = vmatpush1.msra.mxu0 %v3740_v20  ;;  %2527 = vmatmul.mubr.f32.gmra.mxu1 %v5514_v4  ;;  %v5569_v22 = vadd.f32 %v2072_v24, %v5423_v25  ;;  %v3735_v25 = vld [vmem:[%s6169_s5 + $0x538] sm:$0xff]  ;;  %v3829_v20 = vld [vmem:[%s6169_s5 + $0x7a8] sm:$0xff] }
 0x477   : > { %2365 = vmatmul.mubr.f32.gmra.mxu0 %v5514_v4  ;;  %2614 = vmatprep.subr.mxu0 %v3739_v19  ;;  %v2074_v29 = vpop.f32.mrf.mxu0  ;;  %v3796_v19 = vld [vmem:[%s6169_s5 + $0x6a0] sm:$0xff]  ;;  %v3795_v24 = vld [vmem:[%s6169_s5 + $0x698] sm:$0xff] }
 0x478   : > { %2615 = vmatpush1.msra.mxu0 %v3738_v26  ;;  %v5579_v32 = vadd.f32 %v2074_v29, %v5425_v28  ;;  %2370 = vmatprep.mubr.f32.mxu0 %v4343_v52  ;;  %v3827_v26 = vld [vmem:[%s6169_s5 + $0x798] sm:$0xff]  ;;  %v3826_v29 = vld [vmem:[%s6169_s5 + $0x790] sm:$0xff] }
 0x479   : > { %2616 = vmatprep.subr.mxu0 %v3737_v27  ;;  %2532 = vmatprep.mubr.f32.mxu1 %v4343_v52  ;;  %v2078_v36 = vpop.f32.mrf.mxu0  ;;  %v3794_v27 = vld [vmem:[%s6169_s5 + $0x690] sm:$0xff] }
 0x47a   : > { %2617 = vmatpush1.msra.mxu0 %v3736_v30  ;;  %2533 = vmatmul.mubr.f32.gmra.mxu1 %v2228_v33  ;;  %v5590_v28 = vadd.f32 %v2078_v36, %v5427_v31  ;;  %v3730_v31 = vld [vmem:[%s6169_s5 + $0x510] sm:$0xff]  ;;  %v3793_v30 = vld [vmem:[%s6169_s5 + $0x688] sm:$0xff]  ;;  %v3824_v36 = vld [vmem:[%s6169_s5 + $0x780] sm:$0xff] }
 0x47b   : > { %2371 = vmatmul.mubr.f32.gmra.mxu0 %v2228_v33  ;;  %2618 = vmatprep.subr.mxu0 %v3735_v25  ;;  %v3825_v25 = vld [vmem:[%s6169_s5 + $0x788] sm:$0xff] }
 0x47c   : > { %2619 = vmatpush1.msra.mxu0 %v3734_v37  ;;  %2376 = vmatprep.mubr.f32.mxu0 %v4343_v52  ;;  %v3791_v37 = vld [vmem:[%s6169_s5 + $0x678] sm:$0xff] }
 0x47d   : > { %2620 = vmatprep.subr.mxu0 %v3733_v40  ;;  %2538 = vmatprep.mubr.f32.mxu1 %v4343_v52  ;;  %v3823_v40 = vld [vmem:[%s6169_s5 + $0x778] sm:$0xff] }
 0x47e   : > { %2621 = vmatpush1.msra.mxu0 %v3732_v41  ;;  %2539 = vmatmul.mubr.f32.gmra.mxu1 %v5562_v23  ;;  %v3790_v41 = vld [vmem:[%s6169_s5 + $0x670] sm:$0xff] }
 0x47f   : > { %2377 = vmatmul.mubr.f32.gmra.mxu0 %v5562_v23  ;;  %2622 = vmatprep.subr.mxu0 %v3731_v43  ;;  %v3822_v43 = vld [vmem:[%s6169_s5 + $0x770] sm:$0xff] }
 0x480   : > { %2623 = vmatpush1.msra.mxu0 %v3730_v31  ;;  %2658 = vmatprep.mubr.f32.mxu0 %v4343_v52  ;;  %v3789_v31 = vld [vmem:[%s6169_s5 + $0x668] sm:$0xff] }
 0x481   : > { %2624 = vmatprep.subr.mxu0 %v3729_v44  ;;  %4314 = vmatprep.mubr.msk.f32.mxu1 %vm1516_vm2, %v3760_v46  ;;  %v3821_v44 = vld [vmem:[%s6169_s5 + $0x768] sm:$0xff]  ;;  %v3788_v46 = vld [vmem:[%s6169_s5 + $0x660] sm:$0xff] }
 0x482   : > { %2625 = vmatpush1.msra.mxu0 %v3728_v7  ;;  %4315 = vmatmul.mubr.msk.f32.vlgmr.msra.gmra.mxu1 %vm1516_vm2, %v3761_v47  ;;  %v3820_v7 = vld [vmem:[%s6169_s5 + $0x760] sm:$0xff]  ;;  %v3787_v47 = vld [vmem:[%s6169_s5 + $0x658] sm:$0xff] }
 0x483   : > { %2659 = vmatmul.mubr.f32.vlgmr.msra.gmra.mxu0 %v5438_v39  ;;  %4317 = vmatprep.mubr.msk.f32.mxu1 %vm1516_vm2, %v3762_v9  ;;  %v3765_v39 = vld [vmem:[%s6168_s4 + $0xa8] sm:$0xff]  ;;  %v3819_v9 = vld [vmem:[%s6169_s5 + $0x758] sm:$0xff] }
 0x484   : > { %2664 = vmatprep.mubr.f32.mxu0 %v4343_v52  ;;  %3057 = vmatpush1.msra.mxu1 %v3838_v61  ;;  %v3782_v61 = vld [vmem:[%s6169_s5 + $0x630] sm:$0xff] }
 0x485   : > { %3058 = vmatprep.subr.mxu1 %v3837_v63  ;;  %v3781_v63 = vld [vmem:[%s6169_s5 + $0x628] sm:$0xff] }
 0x486   : > { %4318 = vmatmul.mubr.msk.f32.gmra.mxu1 %vm1516_vm2, %v3763_v51  ;;  %v3786_v51 = vld [vmem:[%s6169_s5 + $0x650] sm:$0xff] }
 0x487   : > { %2665 = vmatmul.mubr.f32.gmra.mxu0 %v5431_v35  ;;  %4320 = vmatprep.mubr.msk.f32.mxu1 %vm1516_vm2, %v3764_v55  ;;  %v3767_v35 = vld [vmem:[%s6168_s4 + $0xb8] sm:$0xff]  ;;  %v3818_v55 = vld [vmem:[%s6169_s5 + $0x750] sm:$0xff] }
 0x488   : > { %2670 = vmatprep.mubr.f32.mxu0 %v4343_v52  ;;  %3059 = vmatpush1.msra.mxu1 %v3836_v1  ;;  %v3780_v1 = vld [vmem:[%s6169_s5 + $0x620] sm:$0xff] }
 0x48a   : > { %4321 = vmatmul.mubr.msk.f32.gmra.mxu1 %vm1516_vm2, %v3765_v39  ;;  %v3785_v39 = vld [vmem:[%s6169_s5 + $0x648] sm:$0xff] }
 0x48b   : > { %2671 = vmatmul.mubr.f32.gmra.mxu0 %v5489_v60  ;;  %4323 = vmatprep.mubr.msk.f32.mxu1 %vm1516_vm2, %v3766_v57  ;;  %v3806_v60 = vld [vmem:[%s6169_s5 + $0x6f0] sm:$0xff]  ;;  %v3817_v57 = vld [vmem:[%s6169_s5 + $0x748] sm:$0xff] }
 0x48c   : > { %2676 = vmatprep.mubr.f32.mxu0 %v4343_v52 }
 0x48e   : > { %4324 = vmatmul.mubr.msk.f32.gmra.mxu1 %vm1516_vm2, %v3767_v35  ;;  %v3784_v35 = vld [vmem:[%s6169_s5 + $0x640] sm:$0xff] }
 0x48f   : > { %2677 = vmatmul.mubr.f32.gmra.mxu0 %v5470_v50  ;;  %3120 = vmatprep.mubr.f32.mxu1 %v4343_v52  ;;  %v3807_v50 = vld [vmem:[%s6169_s5 + $0x6f8] sm:$0xff] }
 0x490   : > { %2682 = vmatprep.mubr.f32.mxu0 %v4343_v52  ;;  %2894 = vmatprep.subr.mxu0 %v3807_v50  ;;  %v3816_v50 = vld [vmem:[%s6169_s5 + $0x740] sm:$0xff] }
 0x491   : > { %2895 = vmatpush1.msra.mxu0 %v3806_v60  ;;  %v3815_v60 = vld [vmem:[%s6169_s5 + $0x738] sm:$0xff] }
 0x492   : > { %2896 = vmatprep.subr.mxu0 %v3805_v62  ;;  %v3814_v62 = vld [vmem:[%s6169_s5 + $0x730] sm:$0xff] }
 0x493   : > { %2683 = vmatmul.mubr.f32.gmra.mxu0 %v5537_v13  ;;  %v3799_v13 = vld [vmem:[%s6169_s5 + $0x6b8] sm:$0xff] }
 0x494   : > { %2688 = vmatprep.mubr.f32.mxu0 %v4343_v52  ;;  %2897 = vmatpush1.msra.mxu0 %v3804_v0  ;;  %v3813_v0 = vld [vmem:[%s6169_s5 + $0x728] sm:$0xff] }
 0x495   : > { %2898 = vmatprep.subr.mxu0 %v3803_v3  ;;  %v3812_v3 = vld [vmem:[%s6169_s5 + $0x720] sm:$0xff] }
 0x496   : > { %2899 = vmatpush1.msra.mxu0 %v3802_v56  ;;  %v3811_v56 = vld [vmem:[%s6169_s5 + $0x718] sm:$0xff] }
 0x497   : > { %2689 = vmatmul.mubr.f32.gmra.mxu0 %v5514_v4  ;;  %v3835_v4 = vld [vmem:[%s6169_s5 + $0x7d8] sm:$0xff]  ;;  %2900 = vmatprep.subr.mxu0 %v3801_v6  ;;  %v3810_v6 = vld [vmem:[%s6169_s5 + $0x710] sm:$0xff] }
 0x498   : > { %2694 = vmatprep.mubr.f32.mxu0 %v4343_v52  ;;  %3060 = vmatprep.subr.mxu1 %v3835_v4  ;;  %v3779_v4 = vld [vmem:[%s6169_s5 + $0x618] sm:$0xff] }
 0x499   : > { %3061 = vmatpush1.msra.mxu1 %v3834_v49  ;;  %2901 = vmatpush1.msra.mxu0 %v3800_v8  ;;  %v3778_v49 = vld [vmem:[%s6169_s5 + $0x610] sm:$0xff]  ;;  %v3809_v8 = vld [vmem:[%s6169_s5 + $0x708] sm:$0xff] }
 0x49a   : > { %3062 = vmatprep.subr.mxu1 %v3833_v58  ;;  %2902 = vmatprep.subr.mxu0 %v3799_v13  ;;  %v3777_v58 = vld [vmem:[%s6169_s5 + $0x608] sm:$0xff]  ;;  %v3808_v13 = vld [vmem:[%s6169_s5 + $0x700] sm:$0xff] }
 0x49b   : > { %2695 = vmatmul.mubr.f32.gmra.mxu0 %v2228_v33  ;;  %3063 = vmatpush1.msra.mxu1 %v3832_v12  ;;  %v3792_v33 = vld [vmem:[%s6169_s5 + $0x680] sm:$0xff] }
 0x49c   : > { %2700 = vmatprep.mubr.f32.mxu0 %v4343_v52  ;;  %3064 = vmatprep.subr.mxu1 %v3831_v14  ;;  %v3776_v12 = vld [vmem:[%s6169_s5 + $0x600] sm:$0xff]  ;;  %v3871_v14 = vld [vmem:[%s6169_s5 + $0x8f8] sm:$0xff] }
 0x49d   : > { %2903 = vmatpush1.msra.mxu0 %v3798_v15  ;;  %3065 = vmatpush1.msra.mxu1 %v3830_v17  ;;  %v2080_v15 = vpop.f32.mrf.mxu0 }
 0x49e   : > { %2904 = vmatprep.subr.mxu0 %v3797_v18  ;;  %3066 = vmatprep.subr.mxu1 %v3829_v20 }
 0x49f   : > { %2701 = vmatmul.mubr.f32.gmra.mxu0 %v5562_v23  ;;  %v3828_v23 = vld [vmem:[%s6169_s5 + $0x7a0] sm:$0xff] }
 0x4a0   : > { %2958 = vmatprep.mubr.f32.mxu0 %v4343_v52  ;;  %2905 = vmatpush1.msra.mxu0 %v3796_v19 }
 0x4a1   : > { %3067 = vmatpush1.msra.mxu1 %v3828_v23  ;;  %2906 = vmatprep.subr.mxu0 %v3795_v24 }
 0x4a2   : > { %3068 = vmatprep.subr.mxu1 %v3827_v26  ;;  %2907 = vmatpush1.msra.mxu0 %v3794_v27 }
 0x4a3   : > { %3069 = vmatpush1.msra.mxu1 %v3826_v29  ;;  %2908 = vmatprep.subr.mxu0 %v3793_v30 }
 0x4a4   : > { %3070 = vmatprep.subr.mxu1 %v3825_v25  ;;  %2909 = vmatpush1.msra.mxu0 %v3792_v33 }
 0x4a5   : > { %3071 = vmatpush1.msra.mxu1 %v3824_v36  ;;  %2910 = vmatprep.subr.mxu0 %v3791_v37 }
 0x4a6   : > { %3072 = vmatprep.subr.mxu1 %v3823_v40  ;;  %2911 = vmatpush1.msra.mxu0 %v3790_v41 }
 0x4a7   : > { %3073 = vmatpush1.msra.mxu1 %v3822_v43  ;;  %2912 = vmatprep.subr.mxu0 %v3789_v31 }
 0x4a8   : > { %3074 = vmatprep.subr.mxu1 %v3821_v44  ;;  %2913 = vmatpush1.msra.mxu0 %v3788_v46 }
 0x4a9   : > { %3075 = vmatpush1.msra.mxu1 %v3820_v7  ;;  %2914 = vmatprep.subr.mxu0 %v3787_v47 }
 0x4aa   : > { %3076 = vmatprep.subr.mxu1 %v3819_v9  ;;  %2915 = vmatpush1.msra.mxu0 %v3786_v51 }
 0x4ab   : > { %3077 = vmatpush1.msra.mxu1 %v3818_v55  ;;  %2916 = vmatprep.subr.mxu0 %v3785_v39 }
 0x4ac   : > { %3078 = vmatprep.subr.mxu1 %v3817_v57  ;;  %2917 = vmatpush1.msra.mxu0 %v3784_v35 }
 0x4ad   : > { %3079 = vmatpush1.msra.mxu1 %v3816_v50  ;;  %2918 = vmatprep.subr.mxu0 %v3783_v10 }
 0x4ae   : > { %3080 = vmatprep.subr.mxu1 %v3815_v60  ;;  %2919 = vmatpush1.msra.mxu0 %v3782_v61 }
 0x4af   : > { %3081 = vmatpush1.msra.mxu1 %v3814_v62  ;;  %2920 = vmatprep.subr.mxu0 %v3781_v63 }
 0x4b0   : > { %3082 = vmatprep.subr.mxu1 %v3813_v0  ;;  %2921 = vmatpush1.msra.mxu0 %v3780_v1 }
 0x4b1   : > { %3083 = vmatpush1.msra.mxu1 %v3812_v3  ;;  %2922 = vmatprep.subr.mxu0 %v3779_v4 }
 0x4b2   : > { %3084 = vmatprep.subr.mxu1 %v3811_v56  ;;  %2923 = vmatpush1.msra.mxu0 %v3778_v49 }
 0x4b3   : > { %3085 = vmatpush1.msra.mxu1 %v3810_v6  ;;  %2924 = vmatprep.subr.mxu0 %v3777_v58 }
 0x4b4   : > { %3086 = vmatprep.subr.mxu1 %v3809_v8  ;;  %2925 = vmatpush1.msra.mxu0 %v3776_v12 }
 0x4b5   : > { %3087 = vmatpush1.msra.mxu1 %v3808_v13  ;;  %3218 = vmatprep.subr.mxu0 %v3871_v14 }
 0x51f   : > { %v2336_v17 = vpop.f32.mrf.mxu0  ;;  %v2498_v18 = vpop.f32.mrf.mxu1 }
 0x520   : > { %v2383_v20 = vadd.f32 %v2336_v17, %v5436_v38  ;;  %v2098_v17 = vadd.f32 %v2080_v15, %v5429_v34  ;;  %v3869_v34 = vld [vmem:[%s6169_s5 + $0x8e8] sm:$0xff]  ;;  %v3867_v15 = vld [vmem:[%s6169_s5 + $0x8d8] sm:$0xff] }
 0x521   : > { %v2338_v19 = vpop.f32.mrf.mxu0  ;;  %v2500_v23 = vpop.f32.mrf.mxu1 }
 0x522   : > { %v5859_v24 = vadd.f32 %v2498_v18, %v2383_v20  ;;  %v2384_v26 = vadd.f32 %v2338_v19, %v5445_v42 }
 0x524   : > { %v5862_v27 = vadd.f32 %v2500_v23, %v2384_v26  ;;  %v2342_v29 = vpop.f32.mrf.mxu0 }
 0x525   : > { %v2385_v30 = vadd.f32 %v2342_v29, %v5452_v45  ;;  %v2504_v25 = vpop.f32.mrf.mxu1  ;;  %v3870_v29 = vld [vmem:[%s6169_s5 + $0x8f0] sm:$0xff] }
 0x526   : > { %v2344_v33 = vpop.f32.mrf.mxu0 }
 0x527   : > { %v5865_v36 = vadd.f32 %v2504_v25, %v2385_v30  ;;  %v2386_v37 = vadd.f32 %v2344_v33, %v5463_v48  ;;  %v2506_v40 = vpop.f32.mrf.mxu1  ;;  %v3866_v33 = vld [vmem:[%s6169_s5 + $0x8d0] sm:$0xff] }
 0x529   : > { %v5868_v41 = vadd.f32 %v2506_v40, %v2386_v37  ;;  %v3865_v37 = vld [vmem:[%s6169_s5 + $0x8c8] sm:$0xff]  ;;  %v3864_v40 = vld [vmem:[%s6169_s5 + $0x8c0] sm:$0xff] }
 0x52a   : > { %v2348_v38 = vpop.f32.mrf.mxu0  ;;  %v2510_v43 = vpop.f32.mrf.mxu1 }
 0x52b   : > { %v2387_v31 = vadd.f32 %v2348_v38, %v5475_v54  ;;  %v3863_v38 = vld [vmem:[%s6169_s5 + $0x8b8] sm:$0xff] }
 0x52c   : > { %v2350_v44 = vpop.f32.mrf.mxu0  ;;  %v2512_v42 = vpop.f32.mrf.mxu1 }
 0x52d   : > { %v5871_v46 = vadd.f32 %v2510_v43, %v2387_v31  ;;  %v2388_v7 = vadd.f32 %v2350_v44, %v5483_v59  ;;  %v3862_v31 = vld [vmem:[%s6169_s5 + $0x8b0] sm:$0xff]  ;;  %v3861_v44 = vld [vmem:[%s6169_s5 + $0x8a8] sm:$0xff] }
 0x52e   : > { %v2516_v45 = vpop.f32.mrf.mxu1 }
 0x52f   : > { %v5874_v47 = vadd.f32 %v2512_v42, %v2388_v7  ;;  %v2354_v9 = vpop.f32.mrf.mxu0  ;;  %v3860_v42 = vld [vmem:[%s6169_s5 + $0x8a0] sm:$0xff]  ;;  %v3859_v7 = vld [vmem:[%s6169_s5 + $0x898] sm:$0xff] }
 0x530   : > { %v2389_v51 = vadd.f32 %v2354_v9, %v5498_v11  ;;  %v2518_v48 = vpop.f32.mrf.mxu1  ;;  %v3858_v9 = vld [vmem:[%s6169_s5 + $0x890] sm:$0xff] }
 0x531   : > { %v2356_v55 = vpop.f32.mrf.mxu0 }
 0x532   : > { %v5877_v39 = vadd.f32 %v2516_v45, %v2389_v51  ;;  %v2390_v57 = vadd.f32 %v2356_v55, %v5508_v2  ;;  %v2522_v35 = vpop.f32.mrf.mxu1  ;;  %v3857_v51 = vld [vmem:[%s6169_s5 + $0x888] sm:$0xff]  ;;  %v3855_v55 = vld [vmem:[%s6169_s5 + $0x878] sm:$0xff] }
 0x533   : > { %v2360_v54 = vpop.f32.mrf.mxu0 }
 0x534   : > { %v5880_v50 = vadd.f32 %v2518_v48, %v2390_v57  ;;  %v2391_v10 = vadd.f32 %v2360_v54, %v5521_v5  ;;  %v2524_v60 = vpop.f32.mrf.mxu1  ;;  %v3856_v48 = vld [vmem:[%s6169_s5 + $0x880] sm:$0xff]  ;;  %v3853_v54 = vld [vmem:[%s6169_s5 + $0x868] sm:$0xff] }
 0x535   : > { %v2362_v59 = vpop.f32.mrf.mxu0 }
 0x536   : > { %v5883_v61 = vadd.f32 %v2522_v35, %v2391_v10  ;;  %v2392_v62 = vadd.f32 %v2362_v59, %v5531_v53  ;;  %v2528_v63 = vpop.f32.mrf.mxu1  ;;  %v3854_v35 = vld [vmem:[%s6169_s5 + $0x870] sm:$0xff]  ;;  %v3852_v10 = vld [vmem:[%s6169_s5 + $0x860] sm:$0xff] }
 0x537   : > { %v2366_v11 = vpop.f32.mrf.mxu0 }
 0x538   : > { %v5886_v0 = vadd.f32 %v2524_v60, %v2392_v62  ;;  %v2393_v1 = vadd.f32 %v2366_v11, %v5545_v16  ;;  %v2530_v3 = vpop.f32.mrf.mxu1  ;;  %v3851_v60 = vld [vmem:[%s6169_s5 + $0x858] sm:$0xff]  ;;  %v3850_v62 = vld [vmem:[%s6169_s5 + $0x850] sm:$0xff]  ;;  %v3848_v11 = vld [vmem:[%s6169_s5 + $0x840] sm:$0xff] }
 0x539   : > { %v2368_v2 = vpop.f32.mrf.mxu0 }
 0x53a   : > { %v5889_v4 = vadd.f32 %v2528_v63, %v2393_v1  ;;  %v2394_v56 = vadd.f32 %v2368_v2, %v5555_v21  ;;  %v2534_v49 = vpop.f32.mrf.mxu1  ;;  %v3849_v63 = vld [vmem:[%s6169_s5 + $0x848] sm:$0xff]  ;;  %v3847_v1 = vld [vmem:[%s6169_s5 + $0x838] sm:$0xff]  ;;  %v3846_v2 = vld [vmem:[%s6169_s5 + $0x830] sm:$0xff] }
 0x53b   : > { %v2372_v5 = vpop.f32.mrf.mxu0 }
 0x53c   : > { %v5892_v6 = vadd.f32 %v2530_v3, %v2394_v56  ;;  %v2395_v58 = vadd.f32 %v2372_v5, %v5569_v22  ;;  %v2536_v8 = vpop.f32.mrf.mxu1  ;;  %v3845_v56 = vld [vmem:[%s6169_s5 + $0x828] sm:$0xff]  ;;  %v3843_v5 = vld [vmem:[%s6169_s5 + $0x818] sm:$0xff] }
 0x53d   : > { %v2374_v53 = vpop.f32.mrf.mxu0 }
 0x53e   : > { %v5895_v12 = vadd.f32 %v2534_v49, %v2395_v58  ;;  %v2396_v13 = vadd.f32 %v2374_v53, %v5579_v32  ;;  %v2540_v14 = vpop.f32.mrf.mxu1  ;;  %v3844_v49 = vld [vmem:[%s6169_s5 + $0x820] sm:$0xff]  ;;  %v3842_v58 = vld [vmem:[%s6169_s5 + $0x810] sm:$0xff] }
 0x53f   : > { %v2378_v16 = vpop.f32.mrf.mxu0  ;;  %v3840_v53 = vld [vmem:[%s6169_s5 + $0x800] sm:$0xff] }
 0x540   : > { %v5899_v18 = vadd.f32 %v2536_v8, %v2396_v13  ;;  %v2397_v21 = vadd.f32 %v2378_v16, %v5590_v28  ;;  %v2542_v20 = vpop.f32.mrf.mxu1  ;;  %v3868_v28 = vld [vmem:[%s6169_s5 + $0x8e0] sm:$0xff]  ;;  %v3841_v8 = vld [vmem:[%s6169_s5 + $0x808] sm:$0xff] }
 0x541   : > { %v2380_v19 = vpop.f32.mrf.mxu0 }
 0x542   : > { %v5902_v23 = vadd.f32 %v2540_v14, %v2397_v21  ;;  %v2398_v26 = vadd.f32 %v2380_v19, %v2098_v17  ;;  %v5904_v22 = vpop.f32.mrf.mxu1 }
 0x543   : > { %v2660_v13 = vpop.f32.mrf.mxu0 }
 0x544   : > { %6172 = vst [vmem:[#allocation2_spill] sm:$0xff] %v5902_v23  ;;  %v5909_v32 = vadd.f32 %v2542_v20, %v2398_v26  ;;  %v5911_v30 = vpop.f32.mrf.mxu1 }
 0x545   : > { %2959 = vmatmul.mubr.f32.vlgmr.msra.gmra.mxu0 %v5911_v30  ;;  %3121 = vmatmul.mubr.f32.vlgmr.msra.gmra.mxu1 %v5911_v30  ;;  %v2662_v14 = vpop.f32.mrf.mxu0 }
 0x546   : > { %6173 = vst [vmem:[#allocation3_spill] sm:$0xff] %v5909_v32  ;;  %3219 = vmatpush1.msra.mxu0 %v3870_v29  ;;  %2964 = vmatprep.mubr.f32.mxu0 %v4343_v52  ;;  %v5926_v25 = vpop.f32.mrf.mxu1 }
 0x547   : > { %3220 = vmatprep.subr.mxu0 %v3869_v34  ;;  %3126 = vmatprep.mubr.f32.mxu1 %v4343_v52  ;;  %v2666_v16 = vpop.f32.mrf.mxu0 }
 0x548   : > { %3221 = vmatpush1.msra.mxu0 %v3868_v28  ;;  %v5944_v43 = vpop.f32.mrf.mxu1 }
 0x549   : > { %2965 = vmatmul.mubr.f32.gmra.mxu0 %v5904_v22  ;;  %3127 = vmatmul.mubr.f32.gmra.mxu1 %v5904_v22  ;;  %v2668_v17 = vpop.f32.mrf.mxu0 }
 0x54a   : > { %3222 = vmatprep.subr.mxu0 %v3867_v15  ;;  %2970 = vmatprep.mubr.f32.mxu0 %v4343_v52  ;;  %v5962_v45 = vpop.f32.mrf.mxu1 }
 0x54b   : > { %3223 = vmatpush1.msra.mxu0 %v3866_v33  ;;  %3132 = vmatprep.mubr.f32.mxu1 %v4343_v52  ;;  %v2672_v21 = vpop.f32.mrf.mxu0 }
 0x54c   : > { %3224 = vmatprep.subr.mxu0 %v3865_v37  ;;  %v2842_v57 = vpop.f32.mrf.mxu1 }
 0x54d   : > { %3225 = vmatpush1.msra.mxu0 %v3864_v40  ;;  %3133 = vmatmul.mubr.f32.gmra.mxu1 %v5944_v43  ;;  %v2674_v20 = vpop.f32.mrf.mxu0 }
 0x54e   : > { %2971 = vmatmul.mubr.f32.gmra.mxu0 %v5944_v43  ;;  %3226 = vmatprep.subr.mxu0 %v3863_v38  ;;  %v4325_v59 = vpop.f32.mrf.mxu1 }
 0x54f   : > { %3227 = vmatpush1.msra.mxu0 %v3862_v31  ;;  %2976 = vmatprep.mubr.f32.mxu0 %v4343_v52  ;;  %v6046_v19 = vpop.f32.mrf.mxu0 }
 0x550   : > { %3228 = vmatprep.subr.mxu0 %v3861_v44  ;;  %3138 = vmatprep.mubr.f32.mxu1 %v4343_v52  ;;  %v2852_v3 = vpop.f32.mrf.mxu1 }
 0x551   : > { %3229 = vmatpush1.msra.mxu0 %v3860_v42  ;;  %3139 = vmatmul.mubr.f32.gmra.mxu1 %v5926_v25  ;;  %v6048_v26 = vpop.f32.mrf.mxu0 }
 0x552   : > { %2977 = vmatmul.mubr.f32.gmra.mxu0 %v5926_v25  ;;  %3230 = vmatprep.subr.mxu0 %v3859_v7 }
 0x553   : > { %3231 = vmatpush1.msra.mxu0 %v3858_v9  ;;  %2982 = vmatprep.mubr.f32.mxu0 %v4343_v52 }
 0x554   : > { %3232 = vmatprep.subr.mxu0 %v3857_v51  ;;  %3144 = vmatprep.mubr.f32.mxu1 %v4343_v52 }
 0x555   : > { %3233 = vmatpush1.msra.mxu0 %v3856_v48  ;;  %3145 = vmatmul.mubr.f32.gmra.mxu1 %v2842_v57 }
 0x556   : > { %2983 = vmatmul.mubr.f32.gmra.mxu0 %v2842_v57  ;;  %3234 = vmatprep.subr.mxu0 %v3855_v55 }
 0x557   : > { %3235 = vmatpush1.msra.mxu0 %v3854_v35  ;;  %2988 = vmatprep.mubr.f32.mxu0 %v4343_v52  ;;  %v3349_v35 = vlaneseq }
 0x558   : > { %3236 = vmatprep.subr.mxu0 %v3853_v54  ;;  %3150 = vmatprep.mubr.f32.mxu1 %v4343_v52 }
 0x559   : > { %3237 = vmatpush1.msra.mxu0 %v3852_v10  ;;  %3151 = vmatmul.mubr.f32.gmra.mxu1 %v5962_v45 }
 0x55a   : > { %2989 = vmatmul.mubr.f32.gmra.mxu0 %v5962_v45  ;;  %3238 = vmatprep.subr.mxu0 %v3851_v60 }
 0x55b   : > { %3239 = vmatpush1.msra.mxu0 %v3850_v62  ;;  %2994 = vmatprep.mubr.f32.mxu0 %v4343_v52 }
 0x55c   : > { %3240 = vmatprep.subr.mxu0 %v3849_v63  ;;  %3156 = vmatprep.mubr.f32.mxu1 %v4343_v52 }
 0x55d   : > { %3241 = vmatpush1.msra.mxu0 %v3848_v11  ;;  %3157 = vmatmul.mubr.f32.gmra.mxu1 %v2852_v3  ;;  %v2707_v11 = vadd.f32 %v2660_v13, %v5859_v24  ;;  %v2710_v24 = vadd.f32 %v2668_v17, %v5868_v41 }
 0x55e   : > { %2995 = vmatmul.mubr.f32.gmra.mxu0 %v2852_v3  ;;  %3242 = vmatprep.subr.mxu0 %v3847_v1 }
 0x55f   : > { %3243 = vmatpush1.msra.mxu0 %v3846_v2  ;;  %3000 = vmatprep.mubr.f32.mxu0 %v4343_v52 }
 0x560   : > { %3244 = vmatprep.subr.mxu0 %v3845_v56  ;;  %3162 = vmatprep.mubr.f32.mxu1 %v4343_v52 }
 0x561   : > { %3245 = vmatpush1.msra.mxu0 %v3844_v49  ;;  %3163 = vmatmul.mubr.f32.gmra.mxu1 %v4325_v59 }
 0x562   : > { %3001 = vmatmul.mubr.f32.gmra.mxu0 %v4325_v59  ;;  %3246 = vmatprep.subr.mxu0 %v3843_v5 }
 0x563   : > { %3247 = vmatpush1.msra.mxu0 %v3842_v58  ;;  %3282 = vmatprep.mubr.f32.mxu0 %v4343_v52  ;;  %v3347_v58 = vld [vmem:[%s6170_s6] sm:$0x3] }
 0x564   : > { %3248 = vmatprep.subr.mxu0 %v3841_v8  ;;  %v2709_v8 = vadd.f32 %v2666_v16, %v5865_v36  ;;  %v2712_v36 = vadd.f32 %v2674_v20, %v5874_v47  ;;  %v2714_v47 = vadd.f32 %v6048_v26, %v5880_v50 }
 0x565   : > { %3249 = vmatpush1.msra.mxu0 %v3840_v53 }
 0x566   : > { %3283 = vmatmul.mubr.f32.vlgmr.msra.gmra.mxu0 %v5911_v30 }
 0x567   : > { %3288 = vmatprep.mubr.f32.mxu0 %v4343_v52 }
 0x56a   : > { %3289 = vmatmul.mubr.f32.gmra.mxu0 %v5904_v22  ;;  %v6050_v22 = vpop.f32.mrf.mxu0 }
 0x56b   : > { %3294 = vmatprep.mubr.f32.mxu0 %v4343_v52 }
 0x56c   : > { %v6052_v29 = vpop.f32.mrf.mxu0 }
 0x56d   : > { %v2716_v26 = vadd.f32 %v6052_v29, %v5886_v0 }
 0x56e   : > { %3295 = vmatmul.mubr.f32.gmra.mxu0 %v5944_v43  ;;  %v6054_v30 = vpop.f32.mrf.mxu0 }
 0x56f   : > { %3300 = vmatprep.mubr.f32.mxu0 %v4343_v52 }
 0x570   : > { %v6056_v34 = vpop.f32.mrf.mxu0 }
 0x572   : > { %3301 = vmatmul.mubr.f32.gmra.mxu0 %v5926_v25 }
 0x573   : > { %3306 = vmatprep.mubr.f32.mxu0 %v4343_v52 }
 0x576   : > { %3307 = vmatmul.mubr.f32.gmra.mxu0 %v2842_v57 }
 0x577   : > { %3312 = vmatprep.mubr.f32.mxu0 %v4343_v52 }
 0x57a   : > { %3313 = vmatmul.mubr.f32.gmra.mxu0 %v5962_v45 }
 0x57b   : > { %3318 = vmatprep.mubr.f32.mxu0 %v4343_v52 }
 0x57e   : > { %3319 = vmatmul.mubr.f32.gmra.mxu0 %v2852_v3  ;;  %v2708_v3 = vadd.f32 %v2662_v14, %v5862_v27 }
 0x57f   : > { %3324 = vmatprep.mubr.f32.mxu0 %v4343_v52  ;;  %v6058_v52 = vpop.f32.mrf.mxu0 }
 0x581   : > { %v6060_v28 = vpop.f32.mrf.mxu0 }
 0x582   : > { %3325 = vmatmul.mubr.f32.gmra.mxu0 %v4325_v59  ;;  %v3350_v59 = vshrl.u32 %v3349_v35, 7 }
 0x583   : > { %v6062_v15 = vpop.f32.mrf.mxu0 }
 0x584   : > { %6174 = vst [vmem:[#allocation4_spill] sm:$0xff] %v6062_v15  ;;  %v3351_v56 = vsub.s32 0, %v3350_v59  ;;  %v3355_v35 = vsub.s32 1, %v3350_v59 }
 0x585   : > { %v6064_v25 = vpop.f32.mrf.mxu0 }
 0x586   : > { %6175 = vst [vmem:[#allocation5_spill] sm:$0xff] %v6064_v25  ;;  %v6090_v14 = vrot.slane %v3347_v58, %v3351_v56  ;;  %v6093_v23 = vrot.slane %v3347_v58, %v3355_v35 }
 0x605   : > { %v2960_v33 = vpop.f32.mrf.mxu0  ;;  %v3122_v37 = vpop.f32.mrf.mxu1 }
 0x606   : > { %v3007_v2 = vadd.f32 %v2960_v33, %v2707_v11  ;;  %v2711_v33 = vadd.f32 %v2672_v21, %v5871_v46 }
 0x607   : > { %v2962_v40 = vpop.f32.mrf.mxu0  ;;  %v3124_v43 = vpop.f32.mrf.mxu1 }
 0x608   : > { %v3008_v53 = vadd.f32 %v2962_v40, %v2708_v3  ;;  %v3169_v13 = vadd.f32 %v3122_v37, %v3007_v2  ;;  %v2713_v37 = vadd.f32 %v6046_v19, %v5877_v39  ;;  %v2715_v19 = vadd.f32 %v6050_v22, %v5883_v61 }
 0x609   : > { %v2966_v38 = vpop.f32.mrf.mxu0  ;;  %v3128_v44 = vpop.f32.mrf.mxu1 }
 0x60a   : > { %v3009_v27 = vadd.f32 %v2966_v38, %v2709_v8  ;;  %v3170_v32 = vadd.f32 %v3124_v43, %v3008_v53 }
 0x60b   : > { %v2968_v31 = vpop.f32.mrf.mxu0  ;;  %v3130_v45 = vpop.f32.mrf.mxu1 }
 0x60c   : > { %v3171_v16 = vadd.f32 %v3128_v44, %v3009_v27 }
 0x60d   : > { %v3134_v48 = vpop.f32.mrf.mxu1 }
 0x60e   : > { %v2972_v42 = vpop.f32.mrf.mxu0 }
 0x60f   : > { %v3136_v54 = vpop.f32.mrf.mxu1  ;;  %v3011_v17 = vadd.f32 %v2972_v42, %v2711_v33 }
 0x610   : > { %v2974_v7 = vpop.f32.mrf.mxu0 }
 0x611   : > { %v3140_v62 = vpop.f32.mrf.mxu1  ;;  %v3173_v44 = vadd.f32 %v3134_v48, %v3011_v17 }
 0x612   : > { %v2978_v9 = vpop.f32.mrf.mxu0 }
 0x613   : > { %v3142_v49 = vpop.f32.mrf.mxu1  ;;  %v3013_v42 = vadd.f32 %v2978_v9, %v2713_v37 }
 0x614   : > { %v2980_v51 = vpop.f32.mrf.mxu0 }
 0x615   : > { %v3146_v11 = vpop.f32.mrf.mxu1  ;;  %v3175_v48 = vadd.f32 %v3140_v62, %v3013_v42 }
 0x616   : > { %v6066_v55 = vpop.f32.mrf.mxu0 }
 0x617   : > { %v3148_v40 = vpop.f32.mrf.mxu1  ;;  %v3015_v56 = vadd.f32 %v6066_v55, %v2715_v19  ;;  %v2718_v55 = vadd.f32 %v6056_v34, %v5892_v6 }
 0x618   : > { %v6068_v57 = vpop.f32.mrf.mxu0 }
 0x619   : > { %v3016_v8 = vadd.f32 %v6068_v57, %v2716_v26  ;;  %v3177_v53 = vadd.f32 %v3146_v11, %v3015_v56  ;;  %v2719_v57 = vadd.f32 %v6058_v52, %v5895_v12 }
 0x61a   : > { %v6070_v10 = vpop.f32.mrf.mxu0 }
 0x61c   : > { %v6072_v60 = vpop.f32.mrf.mxu0 }
 0x61d   : > { %v3018_v27 = vadd.f32 %v6072_v60, %v2718_v55 }
 0x61e   : > { %v6074_v63 = vpop.f32.mrf.mxu0 }
 0x620   : > { %v6077_v1 = vpop.f32.mrf.mxu0 }
 0x621   : > { %6176 = vst [vmem:[#allocation6_spill] sm:$0xff] %v6077_v1  ;;  %v3010_v1 = vadd.f32 %v2968_v31, %v2710_v24  ;;  %v3012_v31 = vadd.f32 %v2974_v7, %v2712_v36  ;;  %v3019_v36 = vadd.f32 %v6074_v63, %v2719_v57  ;;  %v6182_v63 = vld [vmem:[#allocation5_spill] sm:$0xff] }
 0x622   : > { %v6080_v5 = vpop.f32.mrf.mxu0 }
 0x623   : > { %6177 = vst [vmem:[#allocation7_spill] sm:$0xff] %v6080_v5  ;;  %v3172_v43 = vadd.f32 %v3130_v45, %v3010_v1  ;;  %v3174_v45 = vadd.f32 %v3136_v54, %v3012_v31  ;;  %v3014_v1 = vadd.f32 %v2980_v51, %v2714_v47  ;;  %v2717_v51 = vadd.f32 %v6054_v30, %v5889_v4 }
 0x624   : > { %v6086_v25 = vpop.f32.mrf.mxu0 }
 0x625   : > { %v3176_v58 = vadd.f32 %v3142_v49, %v3014_v1  ;;  %v3017_v35 = vadd.f32 %v6070_v10, %v2717_v51  ;;  %v2720_v10 = vadd.f32 %v6060_v28, %v5899_v18 }
 0x626   : > { %v3284_v5 = vpop.f32.mrf.mxu0 }
 0x627   : > { %v3331_v15 = vadd.f32 %v3284_v5, %v3169_v13  ;;  %v3178_v13 = vadd.f32 %v3148_v40, %v3016_v8 }
 0x628   : > { %v3286_v41 = vpop.f32.mrf.mxu0  ;;  %v6180_v37 = vld [vmem:[#allocation6_spill] sm:$0xff] }
 0x629   : > { %v3359_v46 = vadd.f32 %v6090_v14, %v3331_v15  ;;  %v3332_v21 = vadd.f32 %v3286_v41, %v3170_v32  ;;  %v3152_v15 = vpop.f32.mrf.mxu1  ;;  %v6178_v41 = vld [vmem:[#allocation2_spill] sm:$0xff]  ;;  %v3020_v40 = vadd.f32 %v6180_v37, %v2720_v10 }
 0x62a   : > { %v3290_v38 = vpop.f32.mrf.mxu0  ;;  %v3179_v11 = vadd.f32 %v3152_v15, %v3017_v35 }
 0x62b   : > { %3375 = vst [vmem:[%s6098_s8] sm:$0xff] %v3359_v46  ;;  %v3360_v59 = vadd.f32 %v6093_v23, %v3332_v21  ;;  %v3333_v3 = vadd.f32 %v3290_v38, %v3171_v16  ;;  %v3154_v54 = vpop.f32.mrf.mxu1  ;;  %v6179_v16 = vld [vmem:[#allocation4_spill] sm:$0xff]  ;;  %v6181_v38 = vld [vmem:[#allocation3_spill] sm:$0xff] }
 0x62c   : > { %v3292_v20 = vpop.f32.mrf.mxu0  ;;  %v2721_v60 = vadd.f32 %v6179_v16, %v6178_v41  ;;  %v3180_v21 = vadd.f32 %v3154_v54, %v3018_v27 }
 0x62d   : > { %3376 = vst [vmem:[%s6098_s8 + $0x8] sm:$0xff] %v3360_v59  ;;  %v3361_v32 = vadd.f32 %v6090_v14, %v3333_v3  ;;  %v3334_v39 = vadd.f32 %v3292_v20, %v3172_v43  ;;  %v3158_v49 = vpop.f32.mrf.mxu1  ;;  %v2722_v43 = vadd.f32 %v6182_v63, %v6181_v38  ;;  %v6183_v3 = vld [vmem:[#allocation7_spill] sm:$0xff] }
 0x62e   : > { %v3296_v7 = vpop.f32.mrf.mxu0  ;;  %v3181_v59 = vadd.f32 %v3158_v49, %v3019_v36  ;;  %v3021_v47 = vadd.f32 %v6183_v3, %v2721_v60 }
 0x62f   : > { %3377 = vst [vmem:[%s6098_s8 + $0x10] sm:$0xff] %v3361_v32  ;;  %v3362_v2 = vadd.f32 %v6093_v23, %v3334_v39  ;;  %v3335_v50 = vadd.f32 %v3296_v7, %v3173_v44  ;;  %v3160_v17 = vpop.f32.mrf.mxu1  ;;  %v3022_v19 = vadd.f32 %v6086_v25, %v2722_v43 }
 0x630   : > { %v3298_v9 = vpop.f32.mrf.mxu0  ;;  %v3182_v39 = vadd.f32 %v3160_v17, %v3020_v40 }
 0x631   : > { %3378 = vst [vmem:[%s6098_s8 + $0x18] sm:$0xff] %v3362_v2  ;;  %v3363_v61 = vadd.f32 %v6090_v14, %v3335_v50  ;;  %v3336_v22 = vadd.f32 %v3298_v9, %v3174_v45  ;;  %v3164_v42 = vpop.f32.mrf.mxu1 }
 0x632   : > { %v3302_v5 = vpop.f32.mrf.mxu0  ;;  %v3183_v1 = vadd.f32 %v3164_v42, %v3021_v47 }
 0x633   : > { %3379 = vst [vmem:[%s6098_s8 + $0x20] sm:$0xff] %v3363_v61  ;;  %v3364_v0 = vadd.f32 %v6093_v23, %v3336_v22  ;;  %v3337_v29 = vadd.f32 %v3302_v5, %v3175_v48  ;;  %v3166_v26 = vpop.f32.mrf.mxu1 }
 0x634   : > { %v3304_v62 = vpop.f32.mrf.mxu0  ;;  %v3184_v48 = vadd.f32 %v3166_v26, %v3022_v19 }
 0x635   : > { %3380 = vst [vmem:[%s6098_s8 + $0x28] sm:$0xff] %v3364_v0  ;;  %v3365_v4 = vadd.f32 %v6090_v14, %v3337_v29  ;;  %v3338_v30 = vadd.f32 %v3304_v62, %v3176_v58 }
 0x636   : > { %v3308_v24 = vpop.f32.mrf.mxu0 }
 0x637   : > { %3381 = vst [vmem:[%s6098_s8 + $0x30] sm:$0xff] %v3365_v4  ;;  %v3366_v6 = vadd.f32 %v6093_v23, %v3338_v30  ;;  %v3339_v34 = vadd.f32 %v3308_v24, %v3177_v53 }
 0x638   : > { %v3310_v33 = vpop.f32.mrf.mxu0 }
 0x639   : > { %3382 = vst [vmem:[%s6098_s8 + $0x38] sm:$0xff] %v3366_v6  ;;  %v3367_v12 = vadd.f32 %v6090_v14, %v3339_v34  ;;  %v3340_v52 = vadd.f32 %v3310_v33, %v3178_v13 }
 0x63a   : > { %v3314_v46 = vpop.f32.mrf.mxu0 }
 0x63b   : > { %3383 = vst [vmem:[%s6098_s8 + $0x40] sm:$0xff] %v3367_v12  ;;  %v3368_v18 = vadd.f32 %v6093_v23, %v3340_v52  ;;  %v3341_v28 = vadd.f32 %v3314_v46, %v3179_v11 }
 0x63c   : > { %v3316_v31 = vpop.f32.mrf.mxu0 }
 0x63d   : > { %3384 = vst [vmem:[%s6098_s8 + $0x48] sm:$0xff] %v3368_v18  ;;  %v3369_v20 = vadd.f32 %v6090_v14, %v3341_v28  ;;  %v3342_v44 = vadd.f32 %v3316_v31, %v3180_v21 }
 0x63e   : > { %v3320_v32 = vpop.f32.mrf.mxu0 }
 0x63f   : > { %3385 = vst [vmem:[%s6098_s8 + $0x50] sm:$0xff] %v3369_v20  ;;  %v3370_v15 = vadd.f32 %v6093_v23, %v3342_v44  ;;  %v3343_v7 = vadd.f32 %v3320_v32, %v3181_v59 }
 0x640   : > { %v3322_v45 = vpop.f32.mrf.mxu0 }
 0x641   : > { %3386 = vst [vmem:[%s6098_s8 + $0x58] sm:$0xff] %v3370_v15  ;;  %v3371_v2 = vadd.f32 %v6090_v14, %v3343_v7  ;;  %v3344_v50 = vadd.f32 %v3322_v45, %v3182_v39 }
 0x642   : > { %v3326_v9 = vpop.f32.mrf.mxu0 }
 0x643   : > { %3387 = vst [vmem:[%s6098_s8 + $0x60] sm:$0xff] %v3371_v2  ;;  %v3372_v56 = vadd.f32 %v6093_v23, %v3344_v50  ;;  %v3345_v25 = vadd.f32 %v3326_v9, %v3183_v1 }
 0x644   : > { %v3328_v61 = vpop.f32.mrf.mxu0 }
 0x645   : > { %3388 = vst [vmem:[%s6098_s8 + $0x68] sm:$0xff] %v3372_v56  ;;  %v3373_v22 = vadd.f32 %v6090_v14, %v3345_v25  ;;  %v3346_v51 = vadd.f32 %v3328_v61, %v3184_v48 }
 0x647   : > { %3389 = vst [vmem:[%s6098_s8 + $0x70] sm:$0xff] %v3373_v22  ;;  %v3374_v54 = vadd.f32 %v6093_v23, %v3346_v51 }
 0x649   : > { %3390 = vst [vmem:[%s6098_s8 + $0x78] sm:$0xff] %v3374_v54 }
 0x64a PF: > { %s17_s24 = sadd.s32 1, %s4341_s24  }
 0x64b   : > { %p14_p4 = scmp.ge.s32.totalorder %s17_s24, 4  }
 0x64d   :  { %16 = sbr.rel (!%p14_p4) target bundleno = 1 (0x1), region = 98 }

</bundles_post_ra>
